<compile_context>
chip_gen: v7x
topology: tpu7x:2x2x1
jax: 0.10.0
libtpu: 0.0.40
codegen_flags: <defaults>
</compile_context>

<pallas_src>
import functools
import math

import jax
import jax.numpy as jnp
from jax.experimental import pallas as pl
from jax.experimental.pallas import tpu as pltpu

_VMEM_LIMIT = 48 * 1024 * 1024   # <= v7x's 64 MiB physical VMEM, fine on v5e/v6e
_LN_EPS = 1e-5
_MASK_NEG = -1e9


def _pick_tile_m(M):
    """Largest row tile that still yields >=2 grid steps (2 TCs on v7x)."""
    for c in (512, 256, 128, 64, 32, 16, 8):
        if M % c == 0 and M // c >= 2:
            return c
    return M


def _pick_tile(n, candidates):
    for c in candidates:
        if n >= c and n % c == 0:
            return c
    return n


# ----------------------------------------------------------------------------
# Linear kernels (single-K fast path + K-tiled accumulator path)
# ----------------------------------------------------------------------------

def _linear_kernel(x_ref, w_ref, b_ref, o_ref, *, activation):
    y = jnp.dot(x_ref[...], w_ref[...], preferred_element_type=jnp.float32)
    y = y + b_ref[...].astype(jnp.float32)
    if activation == "relu":
        y = jnp.maximum(y, 0.0)
    o_ref[...] = y.astype(o_ref.dtype)


def _linear_acc_kernel(x_ref, w_ref, b_ref, o_ref, acc_ref, *, activation):
    @pl.when(pl.program_id(2) == 0)
    def _():
        acc_ref[...] = jnp.zeros_like(acc_ref)

    acc_ref[...] += jnp.dot(x_ref[...], w_ref[...],
                            preferred_element_type=jnp.float32)

    @pl.when(pl.program_id(2) == pl.num_programs(2) - 1)
    def _():
        y = acc_ref[...] + b_ref[...].astype(jnp.float32)
        if activation == "relu":
            y = jnp.maximum(y, 0.0)
        o_ref[...] = y.astype(o_ref.dtype)


def pallas_linear(x, w, b, activation=None):
    """y = activation(x @ w + b). x: (M, K), w: (K, N), b: (N,)."""
    M, K = x.shape
    N = w.shape[1]
    tm = _pick_tile_m(M)
    tn = N if N <= 512 else _pick_tile(N, (512, 256, 128))
    b2 = b.reshape(1, N)

    if K <= 1024:
        # Single K block: no accumulator scratch, no zero-init/finalize passes.
        kernel = functools.partial(_linear_kernel, activation=activation)
        return pl.pallas_call(
            kernel,
            out_shape=jax.ShapeDtypeStruct((M, N), x.dtype),
            grid=(M // tm, N // tn),
            in_specs=[
                pl.BlockSpec((tm, K), lambda i, j: (i, 0)),
                pl.BlockSpec((K, tn), lambda i, j: (0, j)),
                pl.BlockSpec((1, tn), lambda i, j: (0, j)),
            ],
            out_specs=pl.BlockSpec((tm, tn), lambda i, j: (i, j)),
            compiler_params=pltpu.CompilerParams(
                dimension_semantics=("parallel", "parallel"),
                vmem_limit_bytes=_VMEM_LIMIT),
        )(x, w, b2)

    tk = _pick_tile(K, (1024, 512, 256, 128))
    kernel = functools.partial(_linear_acc_kernel, activation=activation)
    return pl.pallas_call(
        kernel,
        out_shape=jax.ShapeDtypeStruct((M, N), x.dtype),
        grid=(M // tm, N // tn, K // tk),
        in_specs=[
            pl.BlockSpec((tm, tk), lambda i, j, k: (i, k)),
            pl.BlockSpec((tk, tn), lambda i, j, k: (k, j)),
            pl.BlockSpec((1, tn), lambda i, j, k: (0, j)),
        ],
        out_specs=pl.BlockSpec((tm, tn), lambda i, j, k: (i, j)),
        scratch_shapes=[pltpu.VMEM((tm, tn), jnp.float32)],
        compiler_params=pltpu.CompilerParams(
            dimension_semantics=("parallel", "parallel", "arbitrary"),
            vmem_limit_bytes=_VMEM_LIMIT),
    )(x, w, b2)


# ----------------------------------------------------------------------------
# Fused FFN block: ReLU(x@W1+b1)@W2 + b2 + residual -> LayerNorm
# ----------------------------------------------------------------------------

def _ffn_ln_kernel(x_ref, w1_ref, b1_ref, w2_ref, b2_ref, g_ref, bb_ref, o_ref,
                   *, eps):
    x = x_ref[...]
    h = jnp.dot(x, w1_ref[...], preferred_element_type=jnp.float32)
    h = jnp.maximum(h + b1_ref[...].astype(jnp.float32), 0.0)
    y = jnp.dot(h.astype(x.dtype), w2_ref[...],
                preferred_element_type=jnp.float32)
    y = y + b2_ref[...].astype(jnp.float32) + x.astype(jnp.float32)
    mean = jnp.mean(y, axis=-1, keepdims=True)
    var = jnp.mean((y - mean) ** 2, axis=-1, keepdims=True)
    y = (y - mean) * jax.lax.rsqrt(var + eps)
    y = y * g_ref[...].astype(jnp.float32) + bb_ref[...].astype(jnp.float32)
    o_ref[...] = y.astype(o_ref.dtype)


def pallas_ffn_block(x, w1, b1, w2, b2, gamma, beta, eps=_LN_EPS):
    M, D = x.shape
    H = w1.shape[1]
    tm = _pick_tile_m(M)
    kernel = functools.partial(_ffn_ln_kernel, eps=eps)
    return pl.pallas_call(
        kernel,
        out_shape=jax.ShapeDtypeStruct((M, D), x.dtype),
        grid=(M // tm,),
        in_specs=[
            pl.BlockSpec((tm, D), lambda i: (i, 0)),
            pl.BlockSpec((D, H), lambda i: (0, 0)),
            pl.BlockSpec((1, H), lambda i: (0, 0)),
            pl.BlockSpec((H, D), lambda i: (0, 0)),
            pl.BlockSpec((1, D), lambda i: (0, 0)),
            pl.BlockSpec((1, D), lambda i: (0, 0)),
            pl.BlockSpec((1, D), lambda i: (0, 0)),
        ],
        out_specs=pl.BlockSpec((tm, D), lambda i: (i, 0)),
        compiler_params=pltpu.CompilerParams(
            dimension_semantics=("parallel",),
            vmem_limit_bytes=_VMEM_LIMIT),
    )(x, w1, b1.reshape(1, H), w2, b2.reshape(1, D),
      gamma.reshape(1, D), beta.reshape(1, D))


# ----------------------------------------------------------------------------
# Fused attention blocks (projections + head-batched attention + Wo + residual
# + LayerNorm), one batch element per grid step.
# ----------------------------------------------------------------------------

def _split_heads(x, n_head, dh):
    # (S, n_head*dh) -> (n_head, S, dh) via static lane slices + leading concat.
    return jnp.concatenate(
        [x[:, h * dh:(h + 1) * dh][None] for h in range(n_head)], axis=0)


def _attention_core(q, k, v, mask_bias, wo, bo, resid, gamma, beta,
                    n_head, eps, out_dtype):
    """q: (Sq, D) pre-scaled, k/v: (Sk, D), mask_bias: (Sq, Sk) additive."""
    Sq, D = q.shape
    dh = D // n_head
    q3 = _split_heads(q, n_head, dh)                        # (H, Sq, dh)
    k3 = _split_heads(k, n_head, dh)                        # (H, Sk, dh)
    v3 = _split_heads(v, n_head, dh)                        # (H, Sk, dh)

    # Head-batched QK^T (single dot_general, not a per-head loop).
    s = jnp.einsum('hqd,hkd->hqk', q3, k3,
                   preferred_element_type=jnp.float32)      # (H, Sq, Sk)
    s = s + mask_bias.astype(jnp.float32)                   # broadcast over H
    s = s - jnp.max(s, axis=-1, keepdims=True)
    p = jnp.exp(s)
    p = p * pl.reciprocal(jnp.sum(p, axis=-1, keepdims=True), approx=False)

    # Head-batched PV.
    ctx = jnp.einsum('hqk,hkd->hqd', p.astype(v3.dtype), v3,
                     preferred_element_type=jnp.float32)    # (H, Sq, dh)
    ctx = jnp.concatenate([ctx[h] for h in range(n_head)], axis=-1)  # (Sq, D)

    # Single full-width output projection.
    y = jnp.dot(ctx.astype(wo.dtype), wo, preferred_element_type=jnp.float32)
    y = y + bo.astype(jnp.float32) + resid.astype(jnp.float32)

    mean = jnp.mean(y, axis=-1, keepdims=True)
    var = jnp.mean((y - mean) ** 2, axis=-1, keepdims=True)
    y = (y - mean) * jax.lax.rsqrt(var + eps)
    y = y * gamma.astype(jnp.float32) + beta.astype(jnp.float32)
    return y.astype(out_dtype)


def _self_attn_ln_kernel(x_ref, mb_ref, wqkv_ref, bqkv_ref, wo_ref, bo_ref,
                         g_ref, bb_ref, o_ref, *, n_head, eps):
    S, D = x_ref.shape
    dh = D // n_head
    scale = 1.0 / math.sqrt(dh)
    x = x_ref[...]
    qkv = jnp.dot(x, wqkv_ref[...], preferred_element_type=jnp.float32)
    qkv = qkv + bqkv_ref[...].astype(jnp.float32)
    q = (qkv[:, :D] * scale).astype(x.dtype)
    k = qkv[:, D:2 * D].astype(x.dtype)
    v = qkv[:, 2 * D:].astype(x.dtype)
    o_ref[...] = _attention_core(q, k, v, mb_ref[...], wo_ref[...], bo_ref[...],
                                 x, g_ref[...], bb_ref[...], n_head, eps,
                                 o_ref.dtype)


def _cross_attn_ln_kernel(x_ref, enc_ref, mb_ref, wq_ref, bq_ref, wkv_ref,
                          bkv_ref, wo_ref, bo_ref, g_ref, bb_ref, o_ref,
                          *, n_head, eps):
    S, D = x_ref.shape
    dh = D // n_head
    scale = 1.0 / math.sqrt(dh)
    x = x_ref[...]
    enc = enc_ref[...]
    q = jnp.dot(x, wq_ref[...], preferred_element_type=jnp.float32)
    q = ((q + bq_ref[...].astype(jnp.float32)) * scale).astype(x.dtype)
    kv = jnp.dot(enc, wkv_ref[...], preferred_element_type=jnp.float32)
    kv = kv + bkv_ref[...].astype(jnp.float32)
    k = kv[:, :D].astype(x.dtype)
    v = kv[:, D:].astype(x.dtype)
    o_ref[...] = _attention_core(q, k, v, mb_ref[...], wo_ref[...], bo_ref[...],
                                 x, g_ref[...], bb_ref[...], n_head, eps,
                                 o_ref.dtype)


def pallas_self_attn_block(x, mask_bias, p, gamma, beta, B, S, n_head,
                           eps=_LN_EPS):
    D = x.shape[-1]
    kernel = functools.partial(_self_attn_ln_kernel, n_head=n_head, eps=eps)
    return pl.pallas_call(
        kernel,
        out_shape=jax.ShapeDtypeStruct((B * S, D), x.dtype),
        grid=(B,),
        in_specs=[
            pl.BlockSpec((S, D), lambda b: (b, 0)),
            pl.BlockSpec((pl.Squeezed(), S, S), lambda b: (b, 0, 0)),
            pl.BlockSpec((D, 3 * D), lambda b: (0, 0)),
            pl.BlockSpec((1, 3 * D), lambda b: (0, 0)),
            pl.BlockSpec((D, D), lambda b: (0, 0)),
            pl.BlockSpec((1, D), lambda b: (0, 0)),
            pl.BlockSpec((1, D), lambda b: (0, 0)),
            pl.BlockSpec((1, D), lambda b: (0, 0)),
        ],
        out_specs=pl.BlockSpec((S, D), lambda b: (b, 0)),
        compiler_params=pltpu.CompilerParams(
            dimension_semantics=("parallel",),
            vmem_limit_bytes=_VMEM_LIMIT),
    )(x, mask_bias, p["w_qkv"], p["b_qkv"].reshape(1, 3 * D),
      p["wo"], p["bo"].reshape(1, D), gamma.reshape(1, D), beta.reshape(1, D))


def pallas_cross_attn_block(x, enc, mask_bias, p, gamma, beta, B, Sq, Sk,
                            n_head, eps=_LN_EPS):
    D = x.shape[-1]
    kernel = functools.partial(_cross_attn_ln_kernel, n_head=n_head, eps=eps)
    return pl.pallas_call(
        kernel,
        out_shape=jax.ShapeDtypeStruct((B * Sq, D), x.dtype),
        grid=(B,),
        in_specs=[
            pl.BlockSpec((Sq, D), lambda b: (b, 0)),
            pl.BlockSpec((Sk, D), lambda b: (b, 0)),
            pl.BlockSpec((pl.Squeezed(), Sq, Sk), lambda b: (b, 0, 0)),
            pl.BlockSpec((D, D), lambda b: (0, 0)),
            pl.BlockSpec((1, D), lambda b: (0, 0)),
            pl.BlockSpec((D, 2 * D), lambda b: (0, 0)),
            pl.BlockSpec((1, 2 * D), lambda b: (0, 0)),
            pl.BlockSpec((D, D), lambda b: (0, 0)),
            pl.BlockSpec((1, D), lambda b: (0, 0)),
            pl.BlockSpec((1, D), lambda b: (0, 0)),
            pl.BlockSpec((1, D), lambda b: (0, 0)),
        ],
        out_specs=pl.BlockSpec((Sq, D), lambda b: (b, 0)),
        compiler_params=pltpu.CompilerParams(
            dimension_semantics=("parallel",),
            vmem_limit_bytes=_VMEM_LIMIT),
    )(x, enc, mask_bias, p["wq"], p["bq"].reshape(1, D),
      p["w_kv"], p["b_kv"].reshape(1, 2 * D),
      p["wo"], p["bo"].reshape(1, D), gamma.reshape(1, D), beta.reshape(1, D))


# ----------------------------------------------------------------------------
# Model glue (activations stay flattened [B*S, D]); 3 pallas_calls per layer
# ----------------------------------------------------------------------------

def decoder_layer(x_flat, enc_flat, self_bias, cross_bias, p, B, S_dec, S_enc, H):
    x_flat = pallas_self_attn_block(x_flat, self_bias, p["self_attn"],
                                    p["ln1_g"], p["ln1_b"], B, S_dec, H)
    x_flat = pallas_cross_attn_block(x_flat, enc_flat, cross_bias,
                                     p["cross_attn"], p["ln2_g"], p["ln2_b"],
                                     B, S_dec, S_enc, H)
    x_flat = pallas_ffn_block(x_flat, p["ffn_w1"], p["ffn_b1"],
                              p["ffn_w2"], p["ffn_b2"], p["ln3_g"], p["ln3_b"])
    return x_flat


def decoder_forward(params, dec_inputs, enc_outputs, dec_self_attn_mask,
                    dec_enc_attn_mask, *, n_head):
    B, S_dec = dec_inputs.shape
    _, S_enc, D = enc_outputs.shape
    # TransformerEmbedding: token embedding (gather) + sinusoidal positional enc.
    # TODO(synk): token-id gather stays in XLA; dropout is identity (inference).
    tok = jnp.take(params["tok_emb"], dec_inputs, axis=0)          # (B, S, D)
    x = tok + params["pos_enc"][:S_dec][None, :, :]
    x_flat = x.reshape(B * S_dec, D)
    enc_flat = enc_outputs.reshape(B * S_enc, D)

    # 0/1 masks -> additive bias once (no per-head compare/select in-kernel).
    self_bias = jnp.where(dec_self_attn_mask == 0, _MASK_NEG, 0.0).astype(jnp.float32)
    cross_bias = jnp.where(dec_enc_attn_mask == 0, _MASK_NEG, 0.0).astype(jnp.float32)

    for lp in params["layers"]:
        x_flat = decoder_layer(x_flat, enc_flat, self_bias, cross_bias, lp,
                               B, S_dec, S_enc, n_head)

    logits = pallas_linear(x_flat, params["out_w"], params["out_b"])
    return logits.reshape(B, S_dec, params["out_w"].shape[-1])


# ----------------------------------------------------------------------------
# Deterministic parameter initialization
# ----------------------------------------------------------------------------

def _sinusoidal_pos_enc(max_len, d_model):
    pos = jnp.arange(max_len, dtype=jnp.float32)[:, None]
    idx = jnp.arange(0, d_model, 2, dtype=jnp.float32)[None, :]
    angle = pos / jnp.power(10000.0, idx / d_model)
    pe = jnp.zeros((max_len, d_model), jnp.float32)
    pe = pe.at[:, 0::2].set(jnp.sin(angle))
    pe = pe.at[:, 1::2].set(jnp.cos(angle))
    return pe


def init_params(key, dec_voc_size, max_len, d_model, ffn_hidden, n_layers):
    def nrm(k, shape, scale=0.02):
        return scale * jax.random.normal(k, shape, jnp.float32)

    keys = jax.random.split(key, 2 + n_layers)
    tok_emb = nrm(keys[0], (dec_voc_size, d_model))
    tok_emb = tok_emb.at[1].set(0.0)   # padding_idx=1 as in TokenEmbedding

    def self_attn_params(k):
        ks = jax.random.split(k, 4)
        wq, wk, wv, wo = (nrm(ks[i], (d_model, d_model)) for i in range(4))
        return {
            "w_qkv": jnp.concatenate([wq, wk, wv], axis=1),
            "b_qkv": jnp.zeros((3 * d_model,), jnp.float32),
            "wo": wo, "bo": jnp.zeros((d_model,), jnp.float32),
        }

    def cross_attn_params(k):
        ks = jax.random.split(k, 4)
        return {
            "wq": nrm(ks[0], (d_model, d_model)),
            "bq": jnp.zeros((d_model,), jnp.float32),
            "w_kv": jnp.concatenate([nrm(ks[1], (d_model, d_model)),
                                     nrm(ks[2], (d_model, d_model))], axis=1),
            "b_kv": jnp.zeros((2 * d_model,), jnp.float32),
            "wo": nrm(ks[3], (d_model, d_model)),
            "bo": jnp.zeros((d_model,), jnp.float32),
        }

    layers = []
    for li in range(n_layers):
        ks = jax.random.split(keys[2 + li], 4)
        layers.append({
            "self_attn": self_attn_params(ks[0]),
            "cross_attn": cross_attn_params(ks[1]),
            "ffn_w1": nrm(ks[2], (d_model, ffn_hidden)),
            "ffn_b1": jnp.zeros((ffn_hidden,), jnp.float32),
            "ffn_w2": nrm(ks[3], (ffn_hidden, d_model)),
            "ffn_b2": jnp.zeros((d_model,), jnp.float32),
            "ln1_g": jnp.ones((d_model,), jnp.float32), "ln1_b": jnp.zeros((d_model,), jnp.float32),
            "ln2_g": jnp.ones((d_model,), jnp.float32), "ln2_b": jnp.zeros((d_model,), jnp.float32),
            "ln3_g": jnp.ones((d_model,), jnp.float32), "ln3_b": jnp.zeros((d_model,), jnp.float32),
        })

    return {
        "tok_emb": tok_emb,
        "pos_enc": _sinusoidal_pos_enc(max_len, d_model),
        "layers": layers,
        "out_w": nrm(keys[1], (d_model, dec_voc_size)),
        "out_b": jnp.zeros((dec_voc_size,), jnp.float32),
    }


# ----------------------------------------------------------------------------
# Main
# ----------------------------------------------------------------------------

if __name__ == "__main__":
    dec_voc_size = 64
    max_len = 32
    d_model = 64
    ffn_hidden = 128
    n_head = 4
    n_layers = 2
    B, S_dec, S_enc = 2, 8, 8

    key = jax.random.PRNGKey(0)
    kp, k1, k2 = jax.random.split(key, 3)
    params = init_params(kp, dec_voc_size, max_len, d_model, ffn_hidden, n_layers)

    dec_inputs = jax.random.randint(k1, (B, S_dec), 0, dec_voc_size, dtype=jnp.int32)
    enc_outputs = jax.random.normal(k2, (B, S_enc, d_model), jnp.float32)
    # self-attention mask: causal (1 = attend, 0 = masked)
    dec_self_attn_mask = jnp.broadcast_to(
        jnp.tril(jnp.ones((S_dec, S_dec), jnp.float32)), (B, S_dec, S_dec))
    # cross-attention mask: attend to all encoder positions
    dec_enc_attn_mask = jnp.ones((B, S_dec, S_enc), jnp.float32)

    fwd = jax.jit(functools.partial(decoder_forward, n_head=n_head))
    out = fwd(params, dec_inputs, enc_outputs, dec_self_attn_mask, dec_enc_attn_mask)
    jax.block_until_ready(out)
    assert out.shape == (B, S_dec, dec_voc_size)
    assert bool(jnp.all(jnp.isfinite(out)))
    print("KERNEL_OK")
</pallas_src>

<mosaic_0001>
module attributes {stable_mosaic.version = 11 : i64} {
  func.func @_ffn_ln_kernel(%arg0: i32, %arg1: memref<8x64xf32, #tpu.memory_space<vmem>>, %arg2: memref<64x128xf32, #tpu.memory_space<vmem>>, %arg3: memref<1x128xf32, #tpu.memory_space<vmem>>, %arg4: memref<128x64xf32, #tpu.memory_space<vmem>>, %arg5: memref<1x64xf32, #tpu.memory_space<vmem>>, %arg6: memref<1x64xf32, #tpu.memory_space<vmem>>, %arg7: memref<1x64xf32, #tpu.memory_space<vmem>>, %arg8: memref<8x64xf32, #tpu.memory_space<vmem>>) attributes {dimension_semantics = [#tpu.dimension_semantics<parallel>], iteration_bounds = array<i64: 2>, scalar_prefetch = 0 : i64, scratch_operands = 0 : i64, tpu.core_type = #tpu.core_type<tc>, window_params = [{transform_indices = @transform_0, window_bounds = array<i64: 8, 64>}, {pipeline_mode = #tpu.pipeline_mode<synchronous>, transform_indices = @transform_1, window_bounds = array<i64: 64, 128>}, {pipeline_mode = #tpu.pipeline_mode<synchronous>, transform_indices = @transform_2, window_bounds = array<i64: 1, 128>}, {pipeline_mode = #tpu.pipeline_mode<synchronous>, transform_indices = @transform_3, window_bounds = array<i64: 128, 64>}, {pipeline_mode = #tpu.pipeline_mode<synchronous>, transform_indices = @transform_4, window_bounds = array<i64: 1, 64>}, {pipeline_mode = #tpu.pipeline_mode<synchronous>, transform_indices = @transform_5, window_bounds = array<i64: 1, 64>}, {pipeline_mode = #tpu.pipeline_mode<synchronous>, transform_indices = @transform_6, window_bounds = array<i64: 1, 64>}, {transform_indices = @transform_7, window_bounds = array<i64: 8, 64>}]} {
    %c0 = arith.constant 0 : index
    %c0_0 = arith.constant 0 : index
    %0 = vector.load %arg1[%c0, %c0_0] : memref<8x64xf32, #tpu.memory_space<vmem>>, vector<8x64xf32>
    %c0_1 = arith.constant 0 : index
    %c0_2 = arith.constant 0 : index
    %1 = vector.load %arg2[%c0_1, %c0_2] : memref<64x128xf32, #tpu.memory_space<vmem>>, vector<64x128xf32>
    %cst = arith.constant dense<0.000000e+00> : vector<8x128xf32>
    %2 = tpu.matmul %0, %1, %cst {dimension_numbers = #tpu.dot_dimension_numbers<[1], [0], [0], [1], [0, 0, 1, 1], [], []>} : vector<8x64xf32>, vector<64x128xf32>, vector<8x128xf32> -> vector<8x128xf32>
    %c0_3 = arith.constant 0 : index
    %c0_4 = arith.constant 0 : index
    %3 = vector.load %arg3[%c0_3, %c0_4] : memref<1x128xf32, #tpu.memory_space<vmem>>, vector<1x128xf32>
    %4 = vector.broadcast %3 : vector<1x128xf32> to vector<8x128xf32>
    %5 = arith.addf %2, %4 : vector<8x128xf32>
    %cst_5 = arith.constant 0.000000e+00 : f32
    %6 = vector.broadcast %cst_5 : f32 to vector<8x128xf32>
    %7 = arith.maximumf %5, %6 : vector<8x128xf32>
    %c0_6 = arith.constant 0 : index
    %c0_7 = arith.constant 0 : index
    %8 = vector.load %arg4[%c0_6, %c0_7] : memref<128x64xf32, #tpu.memory_space<vmem>>, vector<128x64xf32>
    %cst_8 = arith.constant dense<0.000000e+00> : vector<8x64xf32>
    %9 = tpu.matmul %7, %8, %cst_8 {dimension_numbers = #tpu.dot_dimension_numbers<[1], [0], [0], [1], [0, 0, 1, 1], [], []>} : vector<8x128xf32>, vector<128x64xf32>, vector<8x64xf32> -> vector<8x64xf32>
    %c0_9 = arith.constant 0 : index
    %c0_10 = arith.constant 0 : index
    %10 = vector.load %arg5[%c0_9, %c0_10] : memref<1x64xf32, #tpu.memory_space<vmem>>, vector<1x64xf32>
    %11 = vector.broadcast %10 : vector<1x64xf32> to vector<8x64xf32>
    %12 = arith.addf %9, %11 : vector<8x64xf32>
    %13 = arith.addf %12, %0 : vector<8x64xf32>
    %cst_11 = arith.constant dense<0.000000e+00> : vector<8xf32>
    %14 = vector.multi_reduction <add>, %13, %cst_11 [1] : vector<8x64xf32> to vector<8xf32>
    %15 = vector.shape_cast %14 : vector<8xf32> to vector<8x1xf32>
    %cst_12 = arith.constant 6.400000e+01 : f32
    %16 = vector.broadcast %cst_12 : f32 to vector<8x1xf32>
    %17 = arith.divf %15, %16 : vector<8x1xf32>
    %18 = vector.broadcast %17 : vector<8x1xf32> to vector<8x64xf32>
    %19 = arith.subf %13, %18 : vector<8x64xf32>
    %20 = arith.mulf %19, %19 : vector<8x64xf32>
    %cst_13 = arith.constant dense<0.000000e+00> : vector<8xf32>
    %21 = vector.multi_reduction <add>, %20, %cst_13 [1] : vector<8x64xf32> to vector<8xf32>
    %22 = vector.shape_cast %21 : vector<8xf32> to vector<8x1xf32>
    %cst_14 = arith.constant 6.400000e+01 : f32
    %23 = vector.broadcast %cst_14 : f32 to vector<8x1xf32>
    %24 = arith.divf %22, %23 : vector<8x1xf32>
    %25 = vector.broadcast %17 : vector<8x1xf32> to vector<8x64xf32>
    %26 = arith.subf %13, %25 : vector<8x64xf32>
    %cst_15 = arith.constant 9.99999974E-6 : f32
    %27 = vector.broadcast %cst_15 : f32 to vector<8x1xf32>
    %28 = arith.addf %24, %27 : vector<8x1xf32>
    %29 = math.rsqrt %28 : vector<8x1xf32>
    %30 = vector.broadcast %29 : vector<8x1xf32> to vector<8x64xf32>
    %31 = arith.mulf %26, %30 : vector<8x64xf32>
    %c0_16 = arith.constant 0 : index
    %c0_17 = arith.constant 0 : index
    %32 = vector.load %arg6[%c0_16, %c0_17] : memref<1x64xf32, #tpu.memory_space<vmem>>, vector<1x64xf32>
    %33 = vector.broadcast %32 : vector<1x64xf32> to vector<8x64xf32>
    %34 = arith.mulf %31, %33 : vector<8x64xf32>
    %c0_18 = arith.constant 0 : index
    %c0_19 = arith.constant 0 : index
    %35 = vector.load %arg7[%c0_18, %c0_19] : memref<1x64xf32, #tpu.memory_space<vmem>>, vector<1x64xf32>
    %36 = vector.broadcast %35 : vector<1x64xf32> to vector<8x64xf32>
    %37 = arith.addf %34, %36 : vector<8x64xf32>
    %c0_20 = arith.constant 0 : index
    %c0_21 = arith.constant 0 : index
    %38 = vector.load %arg8[%c0_20, %c0_21] : memref<8x64xf32, #tpu.memory_space<vmem>>, vector<8x64xf32>
    tpu.vector_store %arg8[%c0_20, %c0_21], %37 {strides = array<i32>} : memref<8x64xf32, #tpu.memory_space<vmem>>, vector<8x64xf32>,
    return
  }
  func.func @transform_0(%arg0: i32) -> (i32, i32) {
    %c0_i32 = arith.constant 0 : i32
    %c0_i32_0 = arith.constant 0 : i32
    return %arg0, %c0_i32 : i32, i32
  }
  func.func @transform_1(%arg0: i32) -> (i32, i32) {
    %c0_i32 = arith.constant 0 : i32
    %c0_i32_0 = arith.constant 0 : i32
    %c0_i32_1 = arith.constant 0 : i32
    return %c0_i32, %c0_i32_0 : i32, i32
  }
  func.func @transform_2(%arg0: i32) -> (i32, i32) {
    %c0_i32 = arith.constant 0 : i32
    %c0_i32_0 = arith.constant 0 : i32
    %c0_i32_1 = arith.constant 0 : i32
    return %c0_i32, %c0_i32_0 : i32, i32
  }
  func.func @transform_3(%arg0: i32) -> (i32, i32) {
    %c0_i32 = arith.constant 0 : i32
    %c0_i32_0 = arith.constant 0 : i32
    %c0_i32_1 = arith.constant 0 : i32
    return %c0_i32, %c0_i32_0 : i32, i32
  }
  func.func @transform_4(%arg0: i32) -> (i32, i32) {
    %c0_i32 = arith.constant 0 : i32
    %c0_i32_0 = arith.constant 0 : i32
    %c0_i32_1 = arith.constant 0 : i32
    return %c0_i32, %c0_i32_0 : i32, i32
  }
  func.func @transform_5(%arg0: i32) -> (i32, i32) {
    %c0_i32 = arith.constant 0 : i32
    %c0_i32_0 = arith.constant 0 : i32
    %c0_i32_1 = arith.constant 0 : i32
    return %c0_i32, %c0_i32_0 : i32, i32
  }
  func.func @transform_6(%arg0: i32) -> (i32, i32) {
    %c0_i32 = arith.constant 0 : i32
    %c0_i32_0 = arith.constant 0 : i32
    %c0_i32_1 = arith.constant 0 : i32
    return %c0_i32, %c0_i32_0 : i32, i32
  }
  func.func @transform_7(%arg0: i32) -> (i32, i32) {
    %c0_i32 = arith.constant 0 : i32
    %c0_i32_0 = arith.constant 0 : i32
    return %arg0, %c0_i32 : i32, i32
  }
}

module attributes {stable_mosaic.version = 11 : i64} {
  func.func @_self_attn_ln_kernel(%arg0: i32, %arg1: memref<8x64xf32, #tpu.memory_space<vmem>>, %arg2: memref<1x8x8xf32, #tpu.memory_space<vmem>>, %arg3: memref<64x192xf32, #tpu.memory_space<vmem>>, %arg4: memref<1x192xf32, #tpu.memory_space<vmem>>, %arg5: memref<64x64xf32, #tpu.memory_space<vmem>>, %arg6: memref<1x64xf32, #tpu.memory_space<vmem>>, %arg7: memref<1x64xf32, #tpu.memory_space<vmem>>, %arg8: memref<1x64xf32, #tpu.memory_space<vmem>>, %arg9: memref<8x64xf32, #tpu.memory_space<vmem>>) attributes {dimension_semantics = [#tpu.dimension_semantics<parallel>], iteration_bounds = array<i64: 2>, scalar_prefetch = 0 : i64, scratch_operands = 0 : i64, tpu.core_type = #tpu.core_type<tc>, window_params = [{transform_indices = @transform_0, window_bounds = array<i64: 8, 64>}, {transform_indices = @transform_1, window_bounds = array<i64: 1, 8, 8>}, {pipeline_mode = #tpu.pipeline_mode<synchronous>, transform_indices = @transform_2, window_bounds = array<i64: 64, 192>}, {pipeline_mode = #tpu.pipeline_mode<synchronous>, transform_indices = @transform_3, window_bounds = array<i64: 1, 192>}, {pipeline_mode = #tpu.pipeline_mode<synchronous>, transform_indices = @transform_4, window_bounds = array<i64: 64, 64>}, {pipeline_mode = #tpu.pipeline_mode<synchronous>, transform_indices = @transform_5, window_bounds = array<i64: 1, 64>}, {pipeline_mode = #tpu.pipeline_mode<synchronous>, transform_indices = @transform_6, window_bounds = array<i64: 1, 64>}, {pipeline_mode = #tpu.pipeline_mode<synchronous>, transform_indices = @transform_7, window_bounds = array<i64: 1, 64>}, {transform_indices = @transform_8, window_bounds = array<i64: 8, 64>}]} {
    %c0 = arith.constant 0 : index
    %c0_0 = arith.constant 0 : index
    %0 = vector.load %arg1[%c0, %c0_0] : memref<8x64xf32, #tpu.memory_space<vmem>>, vector<8x64xf32>
    %c0_1 = arith.constant 0 : index
    %c0_2 = arith.constant 0 : index
    %1 = vector.load %arg3[%c0_1, %c0_2] : memref<64x192xf32, #tpu.memory_space<vmem>>, vector<64x192xf32>
    %cst = arith.constant dense<0.000000e+00> : vector<8x192xf32>
    %2 = tpu.matmul %0, %1, %cst {dimension_numbers = #tpu.dot_dimension_numbers<[1], [0], [0], [1], [0, 0, 1, 1], [], []>} : vector<8x64xf32>, vector<64x192xf32>, vector<8x192xf32> -> vector<8x192xf32>
    %c0_3 = arith.constant 0 : index
    %c0_4 = arith.constant 0 : index
    %3 = vector.load %arg4[%c0_3, %c0_4] : memref<1x192xf32, #tpu.memory_space<vmem>>, vector<1x192xf32>
    %4 = vector.broadcast %3 : vector<1x192xf32> to vector<8x192xf32>
    %5 = arith.addf %2, %4 : vector<8x192xf32>
    %6 = vector.extract_strided_slice %5 {offsets = [0, 0], sizes = [8, 64], strides = [1, 1]} : vector<8x192xf32> to vector<8x64xf32>
    %cst_5 = arith.constant 2.500000e-01 : f32
    %7 = vector.broadcast %cst_5 : f32 to vector<8x64xf32>
    %8 = arith.mulf %6, %7 : vector<8x64xf32>
    %9 = vector.extract_strided_slice %5 {offsets = [0, 64], sizes = [8, 64], strides = [1, 1]} : vector<8x192xf32> to vector<8x64xf32>
    %10 = vector.extract_strided_slice %5 {offsets = [0, 128], sizes = [8, 64], strides = [1, 1]} : vector<8x192xf32> to vector<8x64xf32>
    %c0_6 = arith.constant 0 : index
    %c0_7 = arith.constant 0 : index
    %c0_8 = arith.constant 0 : index
    %11 = vector.load %arg2[%c0_6, %c0_7, %c0_8] : memref<1x8x8xf32, #tpu.memory_space<vmem>>, vector<1x8x8xf32>
    %12 = vector.shape_cast %11 : vector<1x8x8xf32> to vector<8x8xf32>
    %c0_9 = arith.constant 0 : index
    %c0_10 = arith.constant 0 : index
    %13 = vector.load %arg5[%c0_9, %c0_10] : memref<64x64xf32, #tpu.memory_space<vmem>>, vector<64x64xf32>
    %c0_11 = arith.constant 0 : index
    %c0_12 = arith.constant 0 : index
    %14 = vector.load %arg6[%c0_11, %c0_12] : memref<1x64xf32, #tpu.memory_space<vmem>>, vector<1x64xf32>
    %c0_13 = arith.constant 0 : index
    %c0_14 = arith.constant 0 : index
    %15 = vector.load %arg7[%c0_13, %c0_14] : memref<1x64xf32, #tpu.memory_space<vmem>>, vector<1x64xf32>
    %c0_15 = arith.constant 0 : index
    %c0_16 = arith.constant 0 : index
    %16 = vector.load %arg8[%c0_15, %c0_16] : memref<1x64xf32, #tpu.memory_space<vmem>>, vector<1x64xf32>
    %17 = vector.extract_strided_slice %8 {offsets = [0, 0], sizes = [8, 16], strides = [1, 1]} : vector<8x64xf32> to vector<8x16xf32>
    %18 = vector.shape_cast %17 : vector<8x16xf32> to vector<1x8x16xf32>
    %19 = vector.extract_strided_slice %8 {offsets = [0, 16], sizes = [8, 16], strides = [1, 1]} : vector<8x64xf32> to vector<8x16xf32>
    %20 = vector.shape_cast %19 : vector<8x16xf32> to vector<1x8x16xf32>
    %21 = vector.extract_strided_slice %8 {offsets = [0, 32], sizes = [8, 16], strides = [1, 1]} : vector<8x64xf32> to vector<8x16xf32>
    %22 = vector.shape_cast %21 : vector<8x16xf32> to vector<1x8x16xf32>
    %23 = vector.extract_strided_slice %8 {offsets = [0, 48], sizes = [8, 16], strides = [1, 1]} : vector<8x64xf32> to vector<8x16xf32>
    %24 = vector.shape_cast %23 : vector<8x16xf32> to vector<1x8x16xf32>
    %25 = tpu.concatenate %18, %20, %22, %24 in 0 : vector<1x8x16xf32>, vector<1x8x16xf32>, vector<1x8x16xf32>, vector<1x8x16xf32> -> vector<4x8x16xf32>
    %26 = vector.extract_strided_slice %9 {offsets = [0, 0], sizes = [8, 16], strides = [1, 1]} : vector<8x64xf32> to vector<8x16xf32>
    %27 = vector.shape_cast %26 : vector<8x16xf32> to vector<1x8x16xf32>
    %28 = vector.extract_strided_slice %9 {offsets = [0, 16], sizes = [8, 16], strides = [1, 1]} : vector<8x64xf32> to vector<8x16xf32>
    %29 = vector.shape_cast %28 : vector<8x16xf32> to vector<1x8x16xf32>
    %30 = vector.extract_strided_slice %9 {offsets = [0, 32], sizes = [8, 16], strides = [1, 1]} : vector<8x64xf32> to vector<8x16xf32>
    %31 = vector.shape_cast %30 : vector<8x16xf32> to vector<1x8x16xf32>
    %32 = vector.extract_strided_slice %9 {offsets = [0, 48], sizes = [8, 16], strides = [1, 1]} : vector<8x64xf32> to vector<8x16xf32>
    %33 = vector.shape_cast %32 : vector<8x16xf32> to vector<1x8x16xf32>
    %34 = tpu.concatenate %27, %29, %31, %33 in 0 : vector<1x8x16xf32>, vector<1x8x16xf32>, vector<1x8x16xf32>, vector<1x8x16xf32> -> vector<4x8x16xf32>
    %35 = vector.extract_strided_slice %10 {offsets = [0, 0], sizes = [8, 16], strides = [1, 1]} : vector<8x64xf32> to vector<8x16xf32>
    %36 = vector.shape_cast %35 : vector<8x16xf32> to vector<1x8x16xf32>
    %37 = vector.extract_strided_slice %10 {offsets = [0, 16], sizes = [8, 16], strides = [1, 1]} : vector<8x64xf32> to vector<8x16xf32>
    %38 = vector.shape_cast %37 : vector<8x16xf32> to vector<1x8x16xf32>
    %39 = vector.extract_strided_slice %10 {offsets = [0, 32], sizes = [8, 16], strides = [1, 1]} : vector<8x64xf32> to vector<8x16xf32>
    %40 = vector.shape_cast %39 : vector<8x16xf32> to vector<1x8x16xf32>
    %41 = vector.extract_strided_slice %10 {offsets = [0, 48], sizes = [8, 16], strides = [1, 1]} : vector<8x64xf32> to vector<8x16xf32>
    %42 = vector.shape_cast %41 : vector<8x16xf32> to vector<1x8x16xf32>
    %43 = tpu.concatenate %36, %38, %40, %42 in 0 : vector<1x8x16xf32>, vector<1x8x16xf32>, vector<1x8x16xf32>, vector<1x8x16xf32> -> vector<4x8x16xf32>
    "tpu.trace_start"() <{level = 10 : i32, message = "hqd,hkd->hqk"}> : () -> ()
    %cst_17 = arith.constant dense<0.000000e+00> : vector<4x8x8xf32>
    %44 = tpu.matmul %25, %34, %cst_17 {dimension_numbers = #tpu.dot_dimension_numbers<[2], [2], [1], [1], [0, 0, 0, 1, 1, 1], [0], [0]>} : vector<4x8x16xf32>, vector<4x8x16xf32>, vector<4x8x8xf32> -> vector<4x8x8xf32>
    "tpu.trace_stop"() : () -> ()
    %45 = vector.shape_cast %12 : vector<8x8xf32> to vector<1x8x8xf32>
    %46 = vector.broadcast %45 : vector<1x8x8xf32> to vector<4x8x8xf32>
    %47 = arith.addf %44, %46 : vector<4x8x8xf32>
    %cst_18 = arith.constant dense<0xFF800000> : vector<4x8xf32>
    %48 = vector.multi_reduction <maximumf>, %47, %cst_18 [2] : vector<4x8x8xf32> to vector<4x8xf32>
    %49 = vector.shape_cast %48 : vector<4x8xf32> to vector<4x8x1xf32>
    %50 = vector.broadcast %49 : vector<4x8x1xf32> to vector<4x8x8xf32>
    %51 = arith.subf %47, %50 : vector<4x8x8xf32>
    %52 = math.exp %51 : vector<4x8x8xf32>
    %cst_19 = arith.constant dense<0.000000e+00> : vector<4x8xf32>
    %53 = vector.multi_reduction <add>, %52, %cst_19 [2] : vector<4x8x8xf32> to vector<4x8xf32>
    %54 = vector.shape_cast %53 : vector<4x8xf32> to vector<4x8x1xf32>
    %55 = tpu.reciprocal %54 : vector<4x8x1xf32> -> vector<4x8x1xf32>
    %56 = vector.broadcast %55 : vector<4x8x1xf32> to vector<4x8x8xf32>
    %57 = arith.mulf %52, %56 : vector<4x8x8xf32>
    "tpu.trace_start"() <{level = 10 : i32, message = "hqk,hkd->hqd"}> : () -> ()
    %cst_20 = arith.constant dense<0.000000e+00> : vector<4x8x16xf32>
    %58 = tpu.matmul %57, %43, %cst_20 {dimension_numbers = #tpu.dot_dimension_numbers<[2], [1], [1], [2], [0, 0, 0, 1, 1, 2], [0], [0]>} : vector<4x8x8xf32>, vector<4x8x16xf32>, vector<4x8x16xf32> -> vector<4x8x16xf32>
    "tpu.trace_stop"() : () -> ()
    %59 = vector.extract_strided_slice %58 {offsets = [0, 0, 0], sizes = [1, 8, 16], strides = [1, 1, 1]} : vector<4x8x16xf32> to vector<1x8x16xf32>
    %60 = vector.shape_cast %59 : vector<1x8x16xf32> to vector<8x16xf32>
    %61 = vector.extract_strided_slice %58 {offsets = [1, 0, 0], sizes = [1, 8, 16], strides = [1, 1, 1]} : vector<4x8x16xf32> to vector<1x8x16xf32>
    %62 = vector.shape_cast %61 : vector<1x8x16xf32> to vector<8x16xf32>
    %63 = vector.extract_strided_slice %58 {offsets = [2, 0, 0], sizes = [1, 8, 16], strides = [1, 1, 1]} : vector<4x8x16xf32> to vector<1x8x16xf32>
    %64 = vector.shape_cast %63 : vector<1x8x16xf32> to vector<8x16xf32>
    %65 = vector.extract_strided_slice %58 {offsets = [3, 0, 0], sizes = [1, 8, 16], strides = [1, 1, 1]} : vector<4x8x16xf32> to vector<1x8x16xf32>
    %66 = vector.shape_cast %65 : vector<1x8x16xf32> to vector<8x16xf32>
    %67 = tpu.concatenate %60, %62, %64, %66 in 1 : vector<8x16xf32>, vector<8x16xf32>, vector<8x16xf32>, vector<8x16xf32> -> vector<8x64xf32>
    %cst_21 = arith.constant dense<0.000000e+00> : vector<8x64xf32>
    %68 = tpu.matmul %67, %13, %cst_21 {dimension_numbers = #tpu.dot_dimension_numbers<[1], [0], [0], [1], [0, 0, 1, 1], [], []>} : vector<8x64xf32>, vector<64x64xf32>, vector<8x64xf32> -> vector<8x64xf32>
    %69 = vector.broadcast %14 : vector<1x64xf32> to vector<8x64xf32>
    %70 = arith.addf %68, %69 : vector<8x64xf32>
    %71 = arith.addf %70, %0 : vector<8x64xf32>
    %cst_22 = arith.constant dense<0.000000e+00> : vector<8xf32>
    %72 = vector.multi_reduction <add>, %71, %cst_22 [1] : vector<8x64xf32> to vector<8xf32>
    %73 = vector.shape_cast %72 : vector<8xf32> to vector<8x1xf32>
    %cst_23 = arith.constant 6.400000e+01 : f32
    %74 = vector.broadcast %cst_23 : f32 to vector<8x1xf32>
    %75 = arith.divf %73, %74 : vector<8x1xf32>
    %76 = vector.broadcast %75 : vector<8x1xf32> to vector<8x64xf32>
    %77 = arith.subf %71, %76 : vector<8x64xf32>
    %78 = arith.mulf %77, %77 : vector<8x64xf32>
    %cst_24 = arith.constant dense<0.000000e+00> : vector<8xf32>
    %79 = vector.multi_reduction <add>, %78, %cst_24 [1] : vector<8x64xf32> to vector<8xf32>
    %80 = vector.shape_cast %79 : vector<8xf32> to vector<8x1xf32>
    %cst_25 = arith.constant 6.400000e+01 : f32
    %81 = vector.broadcast %cst_25 : f32 to vector<8x1xf32>
    %82 = arith.divf %80, %81 : vector<8x1xf32>
    %83 = vector.broadcast %75 : vector<8x1xf32> to vector<8x64xf32>
    %84 = arith.subf %71, %83 : vector<8x64xf32>
    %cst_26 = arith.constant 9.99999974E-6 : f32
    %85 = vector.broadcast %cst_26 : f32 to vector<8x1xf32>
    %86 = arith.addf %82, %85 : vector<8x1xf32>
    %87 = math.rsqrt %86 : vector<8x1xf32>
    %88 = vector.broadcast %87 : vector<8x1xf32> to vector<8x64xf32>
    %89 = arith.mulf %84, %88 : vector<8x64xf32>
    %90 = vector.broadcast %15 : vector<1x64xf32> to vector<8x64xf32>
    %91 = arith.mulf %89, %90 : vector<8x64xf32>
    %92 = vector.broadcast %16 : vector<1x64xf32> to vector<8x64xf32>
    %93 = arith.addf %91, %92 : vector<8x64xf32>
    %c0_27 = arith.constant 0 : index
    %c0_28 = arith.constant 0 : index
    %94 = vector.load %arg9[%c0_27, %c0_28] : memref<8x64xf32, #tpu.memory_space<vmem>>, vector<8x64xf32>
    tpu.vector_store %arg9[%c0_27, %c0_28], %93 {strides = array<i32>} : memref<8x64xf32, #tpu.memory_space<vmem>>, vector<8x64xf32>,
    return
  }
  func.func @transform_0(%arg0: i32) -> (i32, i32) {
    %c0_i32 = arith.constant 0 : i32
    %c0_i32_0 = arith.constant 0 : i32
    return %arg0, %c0_i32 : i32, i32
  }
  func.func @transform_1(%arg0: i32) -> (i32, i32, i32) {
    %c0_i32 = arith.constant 0 : i32
    %c0_i32_0 = arith.constant 0 : i32
    %c0_i32_1 = arith.constant 0 : i32
    return %arg0, %c0_i32, %c0_i32_0 : i32, i32, i32
  }
  func.func @transform_2(%arg0: i32) -> (i32, i32) {
    %c0_i32 = arith.constant 0 : i32
    %c0_i32_0 = arith.constant 0 : i32
    %c0_i32_1 = arith.constant 0 : i32
    return %c0_i32, %c0_i32_0 : i32, i32
  }
  func.func @transform_3(%arg0: i32) -> (i32, i32) {
    %c0_i32 = arith.constant 0 : i32
    %c0_i32_0 = arith.constant 0 : i32
    %c0_i32_1 = arith.constant 0 : i32
    return %c0_i32, %c0_i32_0 : i32, i32
  }
  func.func @transform_4(%arg0: i32) -> (i32, i32) {
    %c0_i32 = arith.constant 0 : i32
    %c0_i32_0 = arith.constant 0 : i32
    %c0_i32_1 = arith.constant 0 : i32
    return %c0_i32, %c0_i32_0 : i32, i32
  }
  func.func @transform_5(%arg0: i32) -> (i32, i32) {
    %c0_i32 = arith.constant 0 : i32
    %c0_i32_0 = arith.constant 0 : i32
    %c0_i32_1 = arith.constant 0 : i32
    return %c0_i32, %c0_i32_0 : i32, i32
  }
  func.func @transform_6(%arg0: i32) -> (i32, i32) {
    %c0_i32 = arith.constant 0 : i32
    %c0_i32_0 = arith.constant 0 : i32
    %c0_i32_1 = arith.constant 0 : i32
    return %c0_i32, %c0_i32_0 : i32, i32
  }
  func.func @transform_7(%arg0: i32) -> (i32, i32) {
    %c0_i32 = arith.constant 0 : i32
    %c0_i32_0 = arith.constant 0 : i32
    %c0_i32_1 = arith.constant 0 : i32
    return %c0_i32, %c0_i32_0 : i32, i32
  }
  func.func @transform_8(%arg0: i32) -> (i32, i32) {
    %c0_i32 = arith.constant 0 : i32
    %c0_i32_0 = arith.constant 0 : i32
    return %arg0, %c0_i32 : i32, i32
  }
}

module attributes {stable_mosaic.version = 11 : i64} {
  func.func @_linear_kernel(%arg0: i32, %arg1: i32, %arg2: memref<8x64xf32, #tpu.memory_space<vmem>>, %arg3: memref<64x64xf32, #tpu.memory_space<vmem>>, %arg4: memref<1x64xf32, #tpu.memory_space<vmem>>, %arg5: memref<8x64xf32, #tpu.memory_space<vmem>>) attributes {dimension_semantics = [#tpu.dimension_semantics<parallel>, #tpu.dimension_semantics<parallel>], iteration_bounds = array<i64: 2, 1>, scalar_prefetch = 0 : i64, scratch_operands = 0 : i64, tpu.core_type = #tpu.core_type<tc>, window_params = [{transform_indices = @transform_0, window_bounds = array<i64: 8, 64>}, {transform_indices = @transform_1, window_bounds = array<i64: 64, 64>}, {transform_indices = @transform_2, window_bounds = array<i64: 1, 64>}, {transform_indices = @transform_3, window_bounds = array<i64: 8, 64>}]} {
    %c0 = arith.constant 0 : index
    %c0_0 = arith.constant 0 : index
    %0 = vector.load %arg2[%c0, %c0_0] : memref<8x64xf32, #tpu.memory_space<vmem>>, vector<8x64xf32>
    %c0_1 = arith.constant 0 : index
    %c0_2 = arith.constant 0 : index
    %1 = vector.load %arg3[%c0_1, %c0_2] : memref<64x64xf32, #tpu.memory_space<vmem>>, vector<64x64xf32>
    %cst = arith.constant dense<0.000000e+00> : vector<8x64xf32>
    %2 = tpu.matmul %0, %1, %cst {dimension_numbers = #tpu.dot_dimension_numbers<[1], [0], [0], [1], [0, 0, 1, 1], [], []>} : vector<8x64xf32>, vector<64x64xf32>, vector<8x64xf32> -> vector<8x64xf32>
    %c0_3 = arith.constant 0 : index
    %c0_4 = arith.constant 0 : index
    %3 = vector.load %arg4[%c0_3, %c0_4] : memref<1x64xf32, #tpu.memory_space<vmem>>, vector<1x64xf32>
    %4 = vector.broadcast %3 : vector<1x64xf32> to vector<8x64xf32>
    %5 = arith.addf %2, %4 : vector<8x64xf32>
    %c0_5 = arith.constant 0 : index
    %c0_6 = arith.constant 0 : index
    %6 = vector.load %arg5[%c0_5, %c0_6] : memref<8x64xf32, #tpu.memory_space<vmem>>, vector<8x64xf32>
    tpu.vector_store %arg5[%c0_5, %c0_6], %5 {strides = array<i32>} : memref<8x64xf32, #tpu.memory_space<vmem>>, vector<8x64xf32>,
    return
  }
  func.func @transform_0(%arg0: i32, %arg1: i32) -> (i32, i32) {
    %c0_i32 = arith.constant 0 : i32
    %c0_i32_0 = arith.constant 0 : i32
    return %arg0, %c0_i32 : i32, i32
  }
  func.func @transform_1(%arg0: i32, %arg1: i32) -> (i32, i32) {
    %c0_i32 = arith.constant 0 : i32
    %c0_i32_0 = arith.constant 0 : i32
    return %c0_i32, %arg1 : i32, i32
  }
  func.func @transform_2(%arg0: i32, %arg1: i32) -> (i32, i32) {
    %c0_i32 = arith.constant 0 : i32
    %c0_i32_0 = arith.constant 0 : i32
    return %c0_i32, %arg1 : i32, i32
  }
  func.func @transform_3(%arg0: i32, %arg1: i32) -> (i32, i32) {
    %c0_i32 = arith.constant 0 : i32
    return %arg0, %arg1 : i32, i32
  }
}

module attributes {stable_mosaic.version = 11 : i64} {
  func.func @_cross_attn_ln_kernel(%arg0: i32, %arg1: memref<8x64xf32, #tpu.memory_space<vmem>>, %arg2: memref<8x64xf32, #tpu.memory_space<vmem>>, %arg3: memref<1x8x8xf32, #tpu.memory_space<vmem>>, %arg4: memref<64x64xf32, #tpu.memory_space<vmem>>, %arg5: memref<1x64xf32, #tpu.memory_space<vmem>>, %arg6: memref<64x128xf32, #tpu.memory_space<vmem>>, %arg7: memref<1x128xf32, #tpu.memory_space<vmem>>, %arg8: memref<64x64xf32, #tpu.memory_space<vmem>>, %arg9: memref<1x64xf32, #tpu.memory_space<vmem>>, %arg10: memref<1x64xf32, #tpu.memory_space<vmem>>, %arg11: memref<1x64xf32, #tpu.memory_space<vmem>>, %arg12: memref<8x64xf32, #tpu.memory_space<vmem>>) attributes {dimension_semantics = [#tpu.dimension_semantics<parallel>], iteration_bounds = array<i64: 2>, scalar_prefetch = 0 : i64, scratch_operands = 0 : i64, tpu.core_type = #tpu.core_type<tc>, window_params = [{transform_indices = @transform_0, window_bounds = array<i64: 8, 64>}, {transform_indices = @transform_1, window_bounds = array<i64: 8, 64>}, {transform_indices = @transform_2, window_bounds = array<i64: 1, 8, 8>}, {pipeline_mode = #tpu.pipeline_mode<synchronous>, transform_indices = @transform_3, window_bounds = array<i64: 64, 64>}, {pipeline_mode = #tpu.pipeline_mode<synchronous>, transform_indices = @transform_4, window_bounds = array<i64: 1, 64>}, {pipeline_mode = #tpu.pipeline_mode<synchronous>, transform_indices = @transform_5, window_bounds = array<i64: 64, 128>}, {pipeline_mode = #tpu.pipeline_mode<synchronous>, transform_indices = @transform_6, window_bounds = array<i64: 1, 128>}, {pipeline_mode = #tpu.pipeline_mode<synchronous>, transform_indices = @transform_7, window_bounds = array<i64: 64, 64>}, {pipeline_mode = #tpu.pipeline_mode<synchronous>, transform_indices = @transform_8, window_bounds = array<i64: 1, 64>}, {pipeline_mode = #tpu.pipeline_mode<synchronous>, transform_indices = @transform_9, window_bounds = array<i64: 1, 64>}, {pipeline_mode = #tpu.pipeline_mode<synchronous>, transform_indices = @transform_10, window_bounds = array<i64: 1, 64>}, {transform_indices = @transform_11, window_bounds = array<i64: 8, 64>}]} {
    %c0 = arith.constant 0 : index
    %c0_0 = arith.constant 0 : index
    %0 = vector.load %arg1[%c0, %c0_0] : memref<8x64xf32, #tpu.memory_space<vmem>>, vector<8x64xf32>
    %c0_1 = arith.constant 0 : index
    %c0_2 = arith.constant 0 : index
    %1 = vector.load %arg2[%c0_1, %c0_2] : memref<8x64xf32, #tpu.memory_space<vmem>>, vector<8x64xf32>
    %c0_3 = arith.constant 0 : index
    %c0_4 = arith.constant 0 : index
    %2 = vector.load %arg4[%c0_3, %c0_4] : memref<64x64xf32, #tpu.memory_space<vmem>>, vector<64x64xf32>
    %cst = arith.constant dense<0.000000e+00> : vector<8x64xf32>
    %3 = tpu.matmul %0, %2, %cst {dimension_numbers = #tpu.dot_dimension_numbers<[1], [0], [0], [1], [0, 0, 1, 1], [], []>} : vector<8x64xf32>, vector<64x64xf32>, vector<8x64xf32> -> vector<8x64xf32>
    %c0_5 = arith.constant 0 : index
    %c0_6 = arith.constant 0 : index
    %4 = vector.load %arg5[%c0_5, %c0_6] : memref<1x64xf32, #tpu.memory_space<vmem>>, vector<1x64xf32>
    %5 = vector.broadcast %4 : vector<1x64xf32> to vector<8x64xf32>
    %6 = arith.addf %3, %5 : vector<8x64xf32>
    %cst_7 = arith.constant 2.500000e-01 : f32
    %7 = vector.broadcast %cst_7 : f32 to vector<8x64xf32>
    %8 = arith.mulf %6, %7 : vector<8x64xf32>
    %c0_8 = arith.constant 0 : index
    %c0_9 = arith.constant 0 : index
    %9 = vector.load %arg6[%c0_8, %c0_9] : memref<64x128xf32, #tpu.memory_space<vmem>>, vector<64x128xf32>
    %cst_10 = arith.constant dense<0.000000e+00> : vector<8x128xf32>
    %10 = tpu.matmul %1, %9, %cst_10 {dimension_numbers = #tpu.dot_dimension_numbers<[1], [0], [0], [1], [0, 0, 1, 1], [], []>} : vector<8x64xf32>, vector<64x128xf32>, vector<8x128xf32> -> vector<8x128xf32>
    %c0_11 = arith.constant 0 : index
    %c0_12 = arith.constant 0 : index
    %11 = vector.load %arg7[%c0_11, %c0_12] : memref<1x128xf32, #tpu.memory_space<vmem>>, vector<1x128xf32>
    %12 = vector.broadcast %11 : vector<1x128xf32> to vector<8x128xf32>
    %13 = arith.addf %10, %12 : vector<8x128xf32>
    %14 = vector.extract_strided_slice %13 {offsets = [0, 0], sizes = [8, 64], strides = [1, 1]} : vector<8x128xf32> to vector<8x64xf32>
    %15 = vector.extract_strided_slice %13 {offsets = [0, 64], sizes = [8, 64], strides = [1, 1]} : vector<8x128xf32> to vector<8x64xf32>
    %c0_13 = arith.constant 0 : index
    %c0_14 = arith.constant 0 : index
    %c0_15 = arith.constant 0 : index
    %16 = vector.load %arg3[%c0_13, %c0_14, %c0_15] : memref<1x8x8xf32, #tpu.memory_space<vmem>>, vector<1x8x8xf32>
    %17 = vector.shape_cast %16 : vector<1x8x8xf32> to vector<8x8xf32>
    %c0_16 = arith.constant 0 : index
    %c0_17 = arith.constant 0 : index
    %18 = vector.load %arg8[%c0_16, %c0_17] : memref<64x64xf32, #tpu.memory_space<vmem>>, vector<64x64xf32>
    %c0_18 = arith.constant 0 : index
    %c0_19 = arith.constant 0 : index
    %19 = vector.load %arg9[%c0_18, %c0_19] : memref<1x64xf32, #tpu.memory_space<vmem>>, vector<1x64xf32>
    %c0_20 = arith.constant 0 : index
    %c0_21 = arith.constant 0 : index
    %20 = vector.load %arg10[%c0_20, %c0_21] : memref<1x64xf32, #tpu.memory_space<vmem>>, vector<1x64xf32>
    %c0_22 = arith.constant 0 : index
    %c0_23 = arith.constant 0 : index
    %21 = vector.load %arg11[%c0_22, %c0_23] : memref<1x64xf32, #tpu.memory_space<vmem>>, vector<1x64xf32>
    %22 = vector.extract_strided_slice %8 {offsets = [0, 0], sizes = [8, 16], strides = [1, 1]} : vector<8x64xf32> to vector<8x16xf32>
    %23 = vector.shape_cast %22 : vector<8x16xf32> to vector<1x8x16xf32>
    %24 = vector.extract_strided_slice %8 {offsets = [0, 16], sizes = [8, 16], strides = [1, 1]} : vector<8x64xf32> to vector<8x16xf32>
    %25 = vector.shape_cast %24 : vector<8x16xf32> to vector<1x8x16xf32>
    %26 = vector.extract_strided_slice %8 {offsets = [0, 32], sizes = [8, 16], strides = [1, 1]} : vector<8x64xf32> to vector<8x16xf32>
    %27 = vector.shape_cast %26 : vector<8x16xf32> to vector<1x8x16xf32>
    %28 = vector.extract_strided_slice %8 {offsets = [0, 48], sizes = [8, 16], strides = [1, 1]} : vector<8x64xf32> to vector<8x16xf32>
    %29 = vector.shape_cast %28 : vector<8x16xf32> to vector<1x8x16xf32>
    %30 = tpu.concatenate %23, %25, %27, %29 in 0 : vector<1x8x16xf32>, vector<1x8x16xf32>, vector<1x8x16xf32>, vector<1x8x16xf32> -> vector<4x8x16xf32>
    %31 = vector.extract_strided_slice %14 {offsets = [0, 0], sizes = [8, 16], strides = [1, 1]} : vector<8x64xf32> to vector<8x16xf32>
    %32 = vector.shape_cast %31 : vector<8x16xf32> to vector<1x8x16xf32>
    %33 = vector.extract_strided_slice %14 {offsets = [0, 16], sizes = [8, 16], strides = [1, 1]} : vector<8x64xf32> to vector<8x16xf32>
    %34 = vector.shape_cast %33 : vector<8x16xf32> to vector<1x8x16xf32>
    %35 = vector.extract_strided_slice %14 {offsets = [0, 32], sizes = [8, 16], strides = [1, 1]} : vector<8x64xf32> to vector<8x16xf32>
    %36 = vector.shape_cast %35 : vector<8x16xf32> to vector<1x8x16xf32>
    %37 = vector.extract_strided_slice %14 {offsets = [0, 48], sizes = [8, 16], strides = [1, 1]} : vector<8x64xf32> to vector<8x16xf32>
    %38 = vector.shape_cast %37 : vector<8x16xf32> to vector<1x8x16xf32>
    %39 = tpu.concatenate %32, %34, %36, %38 in 0 : vector<1x8x16xf32>, vector<1x8x16xf32>, vector<1x8x16xf32>, vector<1x8x16xf32> -> vector<4x8x16xf32>
    %40 = vector.extract_strided_slice %15 {offsets = [0, 0], sizes = [8, 16], strides = [1, 1]} : vector<8x64xf32> to vector<8x16xf32>
    %41 = vector.shape_cast %40 : vector<8x16xf32> to vector<1x8x16xf32>
    %42 = vector.extract_strided_slice %15 {offsets = [0, 16], sizes = [8, 16], strides = [1, 1]} : vector<8x64xf32> to vector<8x16xf32>
    %43 = vector.shape_cast %42 : vector<8x16xf32> to vector<1x8x16xf32>
    %44 = vector.extract_strided_slice %15 {offsets = [0, 32], sizes = [8, 16], strides = [1, 1]} : vector<8x64xf32> to vector<8x16xf32>
    %45 = vector.shape_cast %44 : vector<8x16xf32> to vector<1x8x16xf32>
    %46 = vector.extract_strided_slice %15 {offsets = [0, 48], sizes = [8, 16], strides = [1, 1]} : vector<8x64xf32> to vector<8x16xf32>
    %47 = vector.shape_cast %46 : vector<8x16xf32> to vector<1x8x16xf32>
    %48 = tpu.concatenate %41, %43, %45, %47 in 0 : vector<1x8x16xf32>, vector<1x8x16xf32>, vector<1x8x16xf32>, vector<1x8x16xf32> -> vector<4x8x16xf32>
    "tpu.trace_start"() <{level = 10 : i32, message = "hqd,hkd->hqk"}> : () -> ()
    %cst_24 = arith.constant dense<0.000000e+00> : vector<4x8x8xf32>
    %49 = tpu.matmul %30, %39, %cst_24 {dimension_numbers = #tpu.dot_dimension_numbers<[2], [2], [1], [1], [0, 0, 0, 1, 1, 1], [0], [0]>} : vector<4x8x16xf32>, vector<4x8x16xf32>, vector<4x8x8xf32> -> vector<4x8x8xf32>
    "tpu.trace_stop"() : () -> ()
    %50 = vector.shape_cast %17 : vector<8x8xf32> to vector<1x8x8xf32>
    %51 = vector.broadcast %50 : vector<1x8x8xf32> to vector<4x8x8xf32>
    %52 = arith.addf %49, %51 : vector<4x8x8xf32>
    %cst_25 = arith.constant dense<0xFF800000> : vector<4x8xf32>
    %53 = vector.multi_reduction <maximumf>, %52, %cst_25 [2] : vector<4x8x8xf32> to vector<4x8xf32>
    %54 = vector.shape_cast %53 : vector<4x8xf32> to vector<4x8x1xf32>
    %55 = vector.broadcast %54 : vector<4x8x1xf32> to vector<4x8x8xf32>
    %56 = arith.subf %52, %55 : vector<4x8x8xf32>
    %57 = math.exp %56 : vector<4x8x8xf32>
    %cst_26 = arith.constant dense<0.000000e+00> : vector<4x8xf32>
    %58 = vector.multi_reduction <add>, %57, %cst_26 [2] : vector<4x8x8xf32> to vector<4x8xf32>
    %59 = vector.shape_cast %58 : vector<4x8xf32> to vector<4x8x1xf32>
    %60 = tpu.reciprocal %59 : vector<4x8x1xf32> -> vector<4x8x1xf32>
    %61 = vector.broadcast %60 : vector<4x8x1xf32> to vector<4x8x8xf32>
    %62 = arith.mulf %57, %61 : vector<4x8x8xf32>
    "tpu.trace_start"() <{level = 10 : i32, message = "hqk,hkd->hqd"}> : () -> ()
    %cst_27 = arith.constant dense<0.000000e+00> : vector<4x8x16xf32>
    %63 = tpu.matmul %62, %48, %cst_27 {dimension_numbers = #tpu.dot_dimension_numbers<[2], [1], [1], [2], [0, 0, 0, 1, 1, 2], [0], [0]>} : vector<4x8x8xf32>, vector<4x8x16xf32>, vector<4x8x16xf32> -> vector<4x8x16xf32>
    "tpu.trace_stop"() : () -> ()
    %64 = vector.extract_strided_slice %63 {offsets = [0, 0, 0], sizes = [1, 8, 16], strides = [1, 1, 1]} : vector<4x8x16xf32> to vector<1x8x16xf32>
    %65 = vector.shape_cast %64 : vector<1x8x16xf32> to vector<8x16xf32>
    %66 = vector.extract_strided_slice %63 {offsets = [1, 0, 0], sizes = [1, 8, 16], strides = [1, 1, 1]} : vector<4x8x16xf32> to vector<1x8x16xf32>
    %67 = vector.shape_cast %66 : vector<1x8x16xf32> to vector<8x16xf32>
    %68 = vector.extract_strided_slice %63 {offsets = [2, 0, 0], sizes = [1, 8, 16], strides = [1, 1, 1]} : vector<4x8x16xf32> to vector<1x8x16xf32>
    %69 = vector.shape_cast %68 : vector<1x8x16xf32> to vector<8x16xf32>
    %70 = vector.extract_strided_slice %63 {offsets = [3, 0, 0], sizes = [1, 8, 16], strides = [1, 1, 1]} : vector<4x8x16xf32> to vector<1x8x16xf32>
    %71 = vector.shape_cast %70 : vector<1x8x16xf32> to vector<8x16xf32>
    %72 = tpu.concatenate %65, %67, %69, %71 in 1 : vector<8x16xf32>, vector<8x16xf32>, vector<8x16xf32>, vector<8x16xf32> -> vector<8x64xf32>
    %cst_28 = arith.constant dense<0.000000e+00> : vector<8x64xf32>
    %73 = tpu.matmul %72, %18, %cst_28 {dimension_numbers = #tpu.dot_dimension_numbers<[1], [0], [0], [1], [0, 0, 1, 1], [], []>} : vector<8x64xf32>, vector<64x64xf32>, vector<8x64xf32> -> vector<8x64xf32>
    %74 = vector.broadcast %19 : vector<1x64xf32> to vector<8x64xf32>
    %75 = arith.addf %73, %74 : vector<8x64xf32>
    %76 = arith.addf %75, %0 : vector<8x64xf32>
    %cst_29 = arith.constant dense<0.000000e+00> : vector<8xf32>
    %77 = vector.multi_reduction <add>, %76, %cst_29 [1] : vector<8x64xf32> to vector<8xf32>
    %78 = vector.shape_cast %77 : vector<8xf32> to vector<8x1xf32>
    %cst_30 = arith.constant 6.400000e+01 : f32
    %79 = vector.broadcast %cst_30 : f32 to vector<8x1xf32>
    %80 = arith.divf %78, %79 : vector<8x1xf32>
    %81 = vector.broadcast %80 : vector<8x1xf32> to vector<8x64xf32>
    %82 = arith.subf %76, %81 : vector<8x64xf32>
    %83 = arith.mulf %82, %82 : vector<8x64xf32>
    %cst_31 = arith.constant dense<0.000000e+00> : vector<8xf32>
    %84 = vector.multi_reduction <add>, %83, %cst_31 [1] : vector<8x64xf32> to vector<8xf32>
    %85 = vector.shape_cast %84 : vector<8xf32> to vector<8x1xf32>
    %cst_32 = arith.constant 6.400000e+01 : f32
    %86 = vector.broadcast %cst_32 : f32 to vector<8x1xf32>
    %87 = arith.divf %85, %86 : vector<8x1xf32>
    %88 = vector.broadcast %80 : vector<8x1xf32> to vector<8x64xf32>
    %89 = arith.subf %76, %88 : vector<8x64xf32>
    %cst_33 = arith.constant 9.99999974E-6 : f32
    %90 = vector.broadcast %cst_33 : f32 to vector<8x1xf32>
    %91 = arith.addf %87, %90 : vector<8x1xf32>
    %92 = math.rsqrt %91 : vector<8x1xf32>
    %93 = vector.broadcast %92 : vector<8x1xf32> to vector<8x64xf32>
    %94 = arith.mulf %89, %93 : vector<8x64xf32>
    %95 = vector.broadcast %20 : vector<1x64xf32> to vector<8x64xf32>
    %96 = arith.mulf %94, %95 : vector<8x64xf32>
    %97 = vector.broadcast %21 : vector<1x64xf32> to vector<8x64xf32>
    %98 = arith.addf %96, %97 : vector<8x64xf32>
    %c0_34 = arith.constant 0 : index
    %c0_35 = arith.constant 0 : index
    %99 = vector.load %arg12[%c0_34, %c0_35] : memref<8x64xf32, #tpu.memory_space<vmem>>, vector<8x64xf32>
    tpu.vector_store %arg12[%c0_34, %c0_35], %98 {strides = array<i32>} : memref<8x64xf32, #tpu.memory_space<vmem>>, vector<8x64xf32>,
    return
  }
  func.func @transform_0(%arg0: i32) -> (i32, i32) {
    %c0_i32 = arith.constant 0 : i32
    %c0_i32_0 = arith.constant 0 : i32
    return %arg0, %c0_i32 : i32, i32
  }
  func.func @transform_1(%arg0: i32) -> (i32, i32) {
    %c0_i32 = arith.constant 0 : i32
    %c0_i32_0 = arith.constant 0 : i32
    return %arg0, %c0_i32 : i32, i32
  }
  func.func @transform_2(%arg0: i32) -> (i32, i32, i32) {
    %c0_i32 = arith.constant 0 : i32
    %c0_i32_0 = arith.constant 0 : i32
    %c0_i32_1 = arith.constant 0 : i32
    return %arg0, %c0_i32, %c0_i32_0 : i32, i32, i32
  }
  func.func @transform_3(%arg0: i32) -> (i32, i32) {
    %c0_i32 = arith.constant 0 : i32
    %c0_i32_0 = arith.constant 0 : i32
    %c0_i32_1 = arith.constant 0 : i32
    return %c0_i32, %c0_i32_0 : i32, i32
  }
  func.func @transform_4(%arg0: i32) -> (i32, i32) {
    %c0_i32 = arith.constant 0 : i32
    %c0_i32_0 = arith.constant 0 : i32
    %c0_i32_1 = arith.constant 0 : i32
    return %c0_i32, %c0_i32_0 : i32, i32
  }
  func.func @transform_5(%arg0: i32) -> (i32, i32) {
    %c0_i32 = arith.constant 0 : i32
    %c0_i32_0 = arith.constant 0 : i32
    %c0_i32_1 = arith.constant 0 : i32
    return %c0_i32, %c0_i32_0 : i32, i32
  }
  func.func @transform_6(%arg0: i32) -> (i32, i32) {
    %c0_i32 = arith.constant 0 : i32
    %c0_i32_0 = arith.constant 0 : i32
    %c0_i32_1 = arith.constant 0 : i32
    return %c0_i32, %c0_i32_0 : i32, i32
  }
  func.func @transform_7(%arg0: i32) -> (i32, i32) {
    %c0_i32 = arith.constant 0 : i32
    %c0_i32_0 = arith.constant 0 : i32
    %c0_i32_1 = arith.constant 0 : i32
    return %c0_i32, %c0_i32_0 : i32, i32
  }
  func.func @transform_8(%arg0: i32) -> (i32, i32) {
    %c0_i32 = arith.constant 0 : i32
    %c0_i32_0 = arith.constant 0 : i32
    %c0_i32_1 = arith.constant 0 : i32
    return %c0_i32, %c0_i32_0 : i32, i32
  }
  func.func @transform_9(%arg0: i32) -> (i32, i32) {
    %c0_i32 = arith.constant 0 : i32
    %c0_i32_0 = arith.constant 0 : i32
    %c0_i32_1 = arith.constant 0 : i32
    return %c0_i32, %c0_i32_0 : i32, i32
  }
  func.func @transform_10(%arg0: i32) -> (i32, i32) {
    %c0_i32 = arith.constant 0 : i32
    %c0_i32_0 = arith.constant 0 : i32
    %c0_i32_1 = arith.constant 0 : i32
    return %c0_i32, %c0_i32_0 : i32, i32
  }
  func.func @transform_11(%arg0: i32) -> (i32, i32) {
    %c0_i32 = arith.constant 0 : i32
    %c0_i32_0 = arith.constant 0 : i32
    return %arg0, %c0_i32 : i32, i32
  }
}

</mosaic_0001>

<bundles_post_ra>
// kernel: decoder_forward.13
= control target key start
LH: loop header
LB: loop body
LE: loop exit
PB: predicated region body
PF: predicated region fallthrough
CT: control target
= control target key end

     0   :  { %8 = vsyncpa [#allocation3], 0  ;;  %s768_s0 = inlined_call_operand.vmem [shape: f32[16,64], index: 0, kind: input, shape index: {}]   ;;  %s769_s1 = inlined_call_operand.vmem [shape: f32[64,64], index: 1, kind: input, shape index: {}]   ;;  %s770_s2 = inlined_call_operand.vmem [shape: f32[1,64], index: 2, kind: input, shape index: {}]   ;;  %s771_s3 = inlined_call_operand.hbm [shape: f32[16,64], index: 3, kind: output, shape index: {}]  }
   0x1   :  { %10 = vsyncpa [#allocation3 + $0x1], 0  ;;  %s629_s12 = smov 0   ;;  %s631_s13 = smov 0  }
   0x2   :  { %s633_s14 = smov 0   ;;  %s635_s15 = smov 0  }
   0x3   :  { %s637_s16 = smov 0   ;;  %s639_s17 = smov 0  }
   0x4 LB: > { %s412_s18 = sadd.s32 4294967295, %s603_s17   ;;  %s413_s19 = sadd.s32 4294967294, %s603_s17   ;;  %s603_s17 = sphi %s639_s17, %s16_s17   ;;  %s599_s16 = sphi %s637_s16, %s778_s16   ;;  %s595_s15 = sphi %s635_s15, %s777_s15   ;;  %s591_s14 = sphi %s633_s14, %s776_s14   ;;  %s587_s13 = sphi %s631_s13, %s775_s13   ;;  %s583_s12 = sphi %s629_s12, %s774_s12  }
   0x5   : > { %s28_s20 = sadd.s32 1, %s599_s16  ;;  %s115_s21 = sadd.s32 1, %s591_s14 }
   0x6   : > { %p30_p0 = scmp.ge.s32.totalorder %s28_s20, 2  ;;  %p125_p1 = scmp.ne.s32.totalorder %s591_s14, %s587_s13 }
   0x7   : > { %p126_p2 = scmp.eq.s32.totalorder %s412_s18, 1  ;;  %p131_p3 = scmp.ne.s32.totalorder %s587_s13, %s583_s12 }
   0x8   : > { %s780_s20 = smov (%p30_p0, %s28_s20), 0  ;;  %p132_p5 = scmp.eq.s32.totalorder %s413_s19, 1 }
   0x9   : > { %p669_p4 = por %p126_p2, %p125_p1  ;;  %s110_s23 = ssub.s32 %s599_s16, %s780_s20 }
   0xa   : > { %p418_p6 = scmp.ge.s32.totalorder %s603_s17, 1  ;;  %p113_p7 = scmp.eq.s32.totalorder %s110_s23, 0 }
   0xb   : > { %p676_p8 = por %p132_p5, %p131_p3  ;;  %p170_p9 = scmp.lt.s32.totalorder %s603_s17, 3 }
   0xc   : > { %s682_s25 = scalar_select %p113_p7, %s591_s14, %s115_s21  }
   0xd   : > { %p171_p10 = pnand %p418_p6, %p170_p9 }
   0xe   : > { %v212_v0 = vld [vmem:[%s769_s1] sm:$0xff] (!%p171_p10)  ;;  %v213_v1 = vld [vmem:[%s769_s1 + $0x8] sm:$0xff] (!%p171_p10)  ;;  %v214_v2 = vld [vmem:[%s769_s1 + $0x10] sm:$0xff] (!%p171_p10)  ;;  %v605_v3 = vmov (!%p171_p10), 0.0|0.0   ;;  %vm606_vm0 = vmmov (!%p171_p10), 0   ;;  %v607_v6 = vmov (!%p171_p10), 0.0  }
   0xf   : > { %174 = sbr.rel (%p171_p10) target bundleno = 260 (0x104), region = 32  ;;  %455 = vmatprep.subr.bf16.mxu0 (!%p171_p10), %v605_v3  ;;  %v456_v4 = vpack.c.bf16 (!%p171_p10), %v213_v1, %v212_v0  ;;  %v215_v5 = vld [vmem:[%s769_s1 + $0x18] sm:$0xff] (!%p171_p10)  ;;  %452 = vmatprep.mubr.msk.f32.mxu0 (!%p171_p10), %vm606_vm0, %v607_v6  ;;  %p200_p11 = scmp.lt.s32.totalorder (!%p171_p10), %s595_s15, 1  ;;  %v216_v8 = vld [vmem:[%s769_s1 + $0x20] sm:$0xff] (!%p171_p10)  ;;  %v217_v9 = vld [vmem:[%s769_s1 + $0x28] sm:$0xff] (!%p171_p10)  ;;  %vm227_vm1 = vcmask (!%p171_p10), 523264  }
  0x10   : > { %v459_v7 = vpack.c.bf16 (!%p171_p10), %v215_v5, %v214_v2  ;;  %v462_v10 = vpack.c.bf16 (!%p171_p10), %v217_v9, %v216_v8  ;;  %v218_v11 = vld [vmem:[%s769_s1 + $0x30] sm:$0xff] (!%p171_p10)  ;;  %v219_v12 = vld [vmem:[%s769_s1 + $0x38] sm:$0xff] (!%p171_p10)  ;;  %s197_s30 = sand.u32 (!%p171_p10), 1, %s587_s13   ;;  %v421_v15 = vld [vmem:[%s770_s2] ss:$0 sm:$0xff] (!%p171_p10)  ;;  %s424_s7 = sshll.u32 (!%p171_p10), %s595_s15, 7 }
  0x11   : > { %457 = vmatpush3.bf16.msra.mxu0 (!%p171_p10), %v456_v4  ;;  %v465_v13 = vpack.c.bf16 (!%p171_p10), %v219_v12, %v218_v11  ;;  %s419_s4 = sshll.u32 (!%p171_p10), %s197_s30, 3  ;;  %s721_s18 = scalar_lea.hbm (!%p171_p10), %s771_s3, %s424_s7 }
  0x12   : > { %458 = vmatprep.subr.bf16.mxu0 (!%p171_p10), %v605_v3  ;;  %s199_s8 = scalar_lea.vmem (!%p171_p10), [#allocation2], %s419_s4  ;;  %s303_s19 = scalar_lea.sflag (!%p171_p10), [#allocation3], %s197_s30 }
  0x13   : > { %s317_s9 = sshll.u32 (!%p171_p10), %s199_s8, 4  ;;  %s723_s9 = int_to_ptr.vmem [resolvable:$true] %s317_s9 }
  0x14   : > { %s525_s21 = scalar_lea.vmem (!%p171_p10), %s723_s9, 128 }
  0x15   : > { %460 = vmatpush3.bf16.msra.mxu0 (!%p171_p10), %v459_v7  ;;  %p526_p12 = scmp.ne.s32.totalorder (!%p171_p10), %s723_s9, %s525_s21 }
  0x16   : > { %s201_s11 = scalar_select %p200_p11, %s595_s15, 1  ;;  %461 = vmatprep.subr.bf16.mxu0 %v605_v3 }
  0x17   : > { %p527_p13 = pnand %p526_p12, %p669_p4  ;;  %s608_s15 = smov [#allocation2]  }
  0x18   : > { %s420_s26 = sshll.u32 %s201_s11, 3  ;;  %s529_s23 = sshll.u32 %s608_s15, 4  ;;  %s530_s23 = int_to_ptr.vmem [resolvable:$false] %s529_s23 }
  0x19   : > { %463 = vmatpush3.bf16.msra.mxu0 %v462_v10  ;;  %s203_s29 = scalar_lea.vmem %s768_s0, %s420_s26  ;;  %p528_p0 = pneg %p527_p13 }
  0x1a   : > { %464 = vmatprep.subr.bf16.mxu0 %v605_v3  ;;  %v211_v14 = vld [vmem:[%s203_s29] sm:$0xff]  ;;  %s531_s26 = scalar_lea.vmem %s530_s23, 256  ;;  %p532_p1 = scmp.lt.s32.totalorder %s723_s9, %s530_s23 }
  0x1b   : > { %p533_p2 = scmp.lt.s32.totalorder %s531_s26, %s525_s21 }
  0x1d   : > { %466 = vmatpush3.bf16.msra.mxu0 %v465_v13  ;;  %p534_p3 = por %p533_p2, %p532_p1 }
  0x1f   : > { %p535_p5 = pnand %p534_p3, %p528_p0 }
  0x20   : > { %453 = vmatmul.mubr.msk.f32.vlgmr.msra.gmra.mrb[0].mxu0 %vm227_vm1, %v211_v14 }
  0xf3   : > { %v297_v16 = vpop.f32.mrb[0].mxu0 }
  0xf4   : > { %v298_v17 = vadd.f32 %v421_v15, %v297_v16  ;;  %v454_v18 = vpop.f32.mrb[1].mxu0 }
  0xf6   : > { %301 = vst.msk [vmem:[%s199_s8] sm:$0xff] %vm227_vm1, %v298_v17 }
  0xf7   : > { %538 = shalt.err (!%p535_p5)
}
  0xf8   : > { %s539_s27 = scalar_lea.hbm %s721_s18, 128  ;;  %s543_s30 = scalar_lea.hbm %s771_s3, 256 }
  0xf9   : > { %p540_p6 = scmp.ne.s32.totalorder %s721_s18, %s539_s27  ;;  %p544_p10 = scmp.lt.u32.totalorder %s721_s18, %s771_s3 }
  0xfa   : > { %p545_p11 = scmp.lt.u32.totalorder %s543_s30, %s539_s27  ;;  %p547_p13 = scmp.lt.u32.totalorder %s539_s27, %s721_s18 }
  0xfb   : > { %p541_p7 = pnand %p540_p6, %p669_p4 }
  0xfc   : > { %p546_p12 = por %p545_p11, %p544_p10 }
  0xfd   : > { %p542_p9 = pneg %p541_p7 }
  0xfe   : > { %p548_p0 = por %p547_p13, %p546_p12 }
 0x100   : > { %p549_p1 = pnand %p548_p0, %p542_p9 }
 0x102   : > { %552 = shalt.err (!%p549_p1)
}
 0x103   : > { %467 = dma.vmem_to_hbm [thread:$0]  (%p669_p4), %s723_s9, 128, %s721_s18, %s303_s19  }
 0x104 PF: > { %p473_p2 = scmp.ge.s32.totalorder %s603_s17, 2  ;;  %s329_s6 = sand.u32 1, %s583_s12  }
 0x105   : > { %s330_s7 = scalar_lea.sflag [#allocation3], %s329_s6 }
 0x106   : > { %p470_p3 = pnand %p473_p2, %p676_p8 }
 0x108   : > { %578 = dma.done.wait (!%p470_p3), %s330_s7, 128  }
 0x109   : > { %580 = vsyncadd (!%p470_p3), %s330_s7, 4294967168  ;;  %s16_s17 = sadd.s32 1, %s603_s17   ;;  %s774_s12 = smov %s587_s13 }
 0x10a   : > { %p13_p5 = scmp.ge.s32.totalorder %s16_s17, 4   ;;  %s775_s13 = smov %s591_s14 }
 0x10b   : > { %s776_s14 = smov %s682_s25  ;;  %s777_s15 = smov %s599_s16 }
 0x10c   : > { %s778_s16 = smov %s780_s20  ;;  %15 = sbr.rel (!%p13_p5) target bundleno = 4 (0x4), region = 73 }
 0x113   :  { %335 = vsyncpa [#allocation3], 1 }
 0x114   :  { %337 = vsyncpa [#allocation3 + $0x1], 1 }

// kernel: decoder_forward.9
= control target key start
LH: loop header
LB: loop body
LE: loop exit
PB: predicated region body
PF: predicated region fallthrough
CT: control target
= control target key end

     0   :  { %s737_s24 = smov 0   ;;  %s861_s0 = inlined_call_operand.vmem [shape: f32[16,64], index: 0, kind: input, shape index: {}]   ;;  %s862_s1 = inlined_call_operand.vmem [shape: f32[64,128], index: 1, kind: input, shape index: {}]   ;;  %s863_s2 = inlined_call_operand.vmem [shape: f32[1,128], index: 2, kind: input, shape index: {}]   ;;  %s864_s3 = inlined_call_operand.vmem [shape: f32[128,64], index: 3, kind: input, shape index: {}]   ;;  %s865_s4 = inlined_call_operand.vmem [shape: f32[1,64], index: 4, kind: input, shape index: {}]   ;;  %s866_s5 = inlined_call_operand.vmem [shape: f32[1,64], index: 5, kind: input, shape index: {}]   ;;  %s867_s6 = inlined_call_operand.vmem [shape: f32[1,64], index: 6, kind: input, shape index: {}]   ;;  %s868_s7 = inlined_call_operand.vmem [shape: f32[16,64], index: 7, kind: output, shape index: {}]  }
   0x1 LB: > { %s543_s25 = sadd.s32 4294967295, %s692_s24   ;;  %p547_p0 = scmp.ge.s32.totalorder %s692_s24, 1  ;;  %s692_s24 = sphi %s737_s24, %s17_s24  }
   0x2   : > { %p236_p1 = scmp.lt.s32.totalorder %s692_s24, 3 }
   0x4   : > { %p237_p2 = pnand %p547_p0, %p236_p1 }
   0x5   : > { %v275_v0 = vld [vmem:[%s862_s1] sm:$0xff] (!%p237_p2)  ;;  %v276_v1 = vld [vmem:[%s862_s1 + $0x8] sm:$0xff] (!%p237_p2)  ;;  %v277_v2 = vld [vmem:[%s862_s1 + $0x10] sm:$0xff] (!%p237_p2)  ;;  %v694_v3 = vmov (!%p237_p2), 0.0|0.0   ;;  %vm695_vm0 = vmmov (!%p237_p2), 0   ;;  %v696_v6 = vmov (!%p237_p2), 0.0  }
   0x6   : > { %240 = sbr.rel (%p237_p2) target bundleno = 769 (0x301), region = 48  ;;  %637 = vmatprep.subr.bf16.mxu0 (!%p237_p2), %v694_v3  ;;  %v638_v4 = vpack.c.bf16 (!%p237_p2), %v276_v1, %v275_v0  ;;  %v278_v5 = vld [vmem:[%s862_s1 + $0x18] sm:$0xff] (!%p237_p2)  ;;  %599 = vmatprep.mubr.msk.f32.mxu0 (!%p237_p2), %vm695_vm0, %v696_v6  ;;  %p266_p3 = scmp.lt.s32.totalorder (!%p237_p2), %s543_s25, 1  ;;  %v365_v7 = vld [vmem:[%s864_s3] sm:$0xff] (!%p237_p2)  ;;  %v366_v9 = vld [vmem:[%s864_s3 + $0x8] sm:$0xff] (!%p237_p2)  ;;  %vm290_vm1 = vcmask (!%p237_p2), 523264  }
   0x7   : > { %649 = vmatprep.subr.bf16.mxu1 (!%p237_p2), %v694_v3  ;;  %634 = vmatprep.mubr.msk.f32.mxu1 (!%p237_p2), %vm695_vm0, %v696_v6  ;;  %v641_v8 = vpack.c.bf16 (!%p237_p2), %v278_v5, %v277_v2  ;;  %v367_v10 = vld [vmem:[%s864_s3 + $0x10] sm:$0xff] (!%p237_p2)  ;;  %v368_v11 = vld [vmem:[%s864_s3 + $0x18] sm:$0xff] (!%p237_p2)  ;;  %v279_v12 = vld [vmem:[%s862_s1 + $0x20] sm:$0xff] (!%p237_p2)  ;;  %v650_v14 = vpack.c.bf16 (!%p237_p2), %v366_v9, %v365_v7 }
   0x8   : > { %639 = vmatpush3.bf16.msra.mxu0 (!%p237_p2), %v638_v4  ;;  %v280_v13 = vld [vmem:[%s862_s1 + $0x28] sm:$0xff] (!%p237_p2)  ;;  %v653_v15 = vpack.c.bf16 (!%p237_p2), %v368_v11, %v367_v10  ;;  %v369_v17 = vld [vmem:[%s864_s3 + $0x20] sm:$0xff] (!%p237_p2)  ;;  %v281_v19 = vld [vmem:[%s862_s1 + $0x30] sm:$0xff] (!%p237_p2) }
   0x9   : > { %640 = vmatprep.subr.bf16.mxu0 (!%p237_p2), %v694_v3  ;;  %651 = vmatpush3.bf16.msra.mxu1 (!%p237_p2), %v650_v14  ;;  %v644_v16 = vpack.c.bf16 (!%p237_p2), %v280_v13, %v279_v12  ;;  %v370_v18 = vld [vmem:[%s864_s3 + $0x28] sm:$0xff] (!%p237_p2)  ;;  %v282_v20 = vld [vmem:[%s862_s1 + $0x38] sm:$0xff] (!%p237_p2)  ;;  %v371_v23 = vld [vmem:[%s864_s3 + $0x30] sm:$0xff] (!%p237_p2) }
   0xa   : > { %652 = vmatprep.subr.bf16.mxu1 (!%p237_p2), %v694_v3  ;;  %v656_v21 = vpack.c.bf16 (!%p237_p2), %v370_v18, %v369_v17  ;;  %v647_v22 = vpack.c.bf16 (!%p237_p2), %v282_v20, %v281_v19  ;;  %v372_v24 = vld [vmem:[%s864_s3 + $0x38] sm:$0xff] (!%p237_p2)  ;;  %v373_v27 = vld [vmem:[%s864_s3 + $0x40] sm:$0xff] (!%p237_p2)  ;;  %v374_v28 = vld [vmem:[%s864_s3 + $0x48] sm:$0xff] (!%p237_p2) }
   0xb   : > { %v659_v25 = vpack.c.bf16 (!%p237_p2), %v372_v24, %v371_v23  ;;  %v662_v29 = vpack.c.bf16 (!%p237_p2), %v374_v28, %v373_v27  ;;  %v375_v30 = vld [vmem:[%s864_s3 + $0x50] sm:$0xff] (!%p237_p2)  ;;  %v376_v31 = vld [vmem:[%s864_s3 + $0x58] sm:$0xff] (!%p237_p2)  ;;  %v377_v33 = vld [vmem:[%s864_s3 + $0x60] sm:$0xff] (!%p237_p2) }
   0xc   : > { %642 = vmatpush3.bf16.msra.mxu0 (!%p237_p2), %v641_v8  ;;  %v665_v32 = vpack.c.bf16 (!%p237_p2), %v376_v31, %v375_v30  ;;  %v378_v34 = vld [vmem:[%s864_s3 + $0x68] sm:$0xff] (!%p237_p2)  ;;  %v379_v36 = vld [vmem:[%s864_s3 + $0x70] sm:$0xff] (!%p237_p2)  ;;  %v380_v37 = vld [vmem:[%s864_s3 + $0x78] sm:$0xff] (!%p237_p2) }
   0xd   : > { %s870_s25 = smov (!%p266_p3, %s543_s25), 1  ;;  %643 = vmatprep.subr.bf16.mxu0 %v694_v3  ;;  %654 = vmatpush3.bf16.msra.mxu1 %v653_v15  ;;  %v668_v35 = vpack.c.bf16 %v378_v34, %v377_v33  ;;  %v671_v38 = vpack.c.bf16 %v380_v37, %v379_v36  ;;  %v550_v39 = vld [vmem:[%s863_s2] ss:$0 sm:$0xff] }
   0xe   : > { %s548_s10 = sshll.u32 %s870_s25, 3  ;;  %655 = vmatprep.subr.bf16.mxu1 %v694_v3  ;;  %v552_v44 = vld [vmem:[%s865_s4] ss:$0 sm:$0xff] }
   0xf   : > { %s269_s17 = scalar_lea.vmem %s861_s0, %s548_s10  ;;  %v553_v59 = vld [vmem:[%s866_s5] ss:$0 sm:$0xff]  ;;  %s273_s26 = scalar_lea.vmem %s868_s7, %s548_s10 }
  0x10   : > { %645 = vmatpush3.bf16.msra.mxu0 %v644_v16  ;;  %v274_v26 = vld [vmem:[%s269_s17] sm:$0xff] }
  0x11   : > { %646 = vmatprep.subr.bf16.mxu0 %v694_v3  ;;  %657 = vmatpush3.bf16.msra.mxu1 %v656_v21  ;;  %v554_v61 = vld [vmem:[%s867_s6] ss:$0 sm:$0xff] }
  0x12   : > { %658 = vmatprep.subr.bf16.mxu1 %v694_v3 }
  0x14   : > { %648 = vmatpush3.bf16.msra.mxu0 %v647_v22 }
  0x15   : > { %660 = vmatpush3.bf16.msra.mxu1 %v659_v25 }
  0x16   : > { %661 = vmatprep.subr.bf16.mxu1 %v694_v3 }
  0x17   : > { %600 = vmatmul.mubr.msk.f32.vlgmr.msra.gmra.mrb[0].mxu0 %vm290_vm1, %v274_v26 }
  0x19   : > { %663 = vmatpush3.bf16.msra.mxu1 %v662_v29 }
  0x1a   : > { %664 = vmatprep.subr.bf16.mxu1 %v694_v3 }
  0x1d   : > { %666 = vmatpush3.bf16.msra.mxu1 %v665_v32 }
  0x1e   : > { %667 = vmatprep.subr.bf16.mxu1 %v694_v3 }
  0x21   : > { %669 = vmatpush3.bf16.msra.mxu1 %v668_v35 }
  0x22   : > { %670 = vmatprep.subr.bf16.mxu1 %v694_v3 }
  0x25   : > { %672 = vmatpush3.bf16.msra.mxu1 %v671_v38 }
  0xea   : > { %v360_v40 = vpop.f32.mrb[0].mxu0 }
  0xeb   : > { %v361_v41 = vadd.f32 %v550_v39, %v360_v40  ;;  %v601_v42 = vpop.f32.mrb[1].mxu0 }
  0xed   : > { %v364_v43 = vmax.f32 %v361_v41, 0.0 }
  0xef   : > { %635 = vmatmul.mubr.f32.vlgmr.msra.gmra.mrb[0].mxu1 %v364_v43 }
 0x1c2   : > { %v454_v45 = vpop.f32.mrb[0].mxu1 }
 0x1c3   : > { %v455_v46 = vadd.f32 %v552_v44, %v454_v45  ;;  %v636_v47 = vpop.f32.mrb[1].mxu1 }
 0x1c5   : > { %v458_v48 = vadd.f32 %v455_v46, %v274_v26 }
 0x1c7   : > { %v459_v49 = vsel %vm290_vm1, %v458_v48, 0.0 }
 0x1c8   : > { %460 = vadd.xlane.f32.xlu0 %v459_v49 }
 0x255   : > { %v461_v50 = vpop.xlane.xlu0 %460 }
 0x256   : > { %v463_v51 = vmul.f32 0.015625, %v461_v50 }
 0x258   : > { %v464_v52 = vsub.f32 %v458_v48, %v463_v51 }
 0x25a   : > { %v465_v53 = vmul.f32 %v464_v52, %v464_v52 }
 0x25c   : > { %v466_v54 = vsel %vm290_vm1, %v465_v53, 0.0 }
 0x25d   : > { %467 = vadd.xlane.f32.xlu0 %v466_v54 }
 0x2ea   : > { %v468_v55 = vpop.xlane.xlu0 %467 }
 0x2eb   : > { %v469_v56 = vmul.f32 0.015625, %v468_v55 }
 0x2ed   : > { %v470_v57 = vadd.f32 1e-05, %v469_v56 }
 0x2ef   : > { %684 = vrsqrt.f32 %v470_v57 }
 0x2f9   : > { %v685_v58 = vpop.eup %684 }
 0x2fa   : > { %v472_v60 = vmul.f32 %v685_v58, %v464_v52 }
 0x2fc   : > { %v480_v62 = vmul.f32 %v553_v59, %v472_v60 }
 0x2fe   : > { %v488_v63 = vadd.f32 %v554_v61, %v480_v62 }
 0x300   : > { %489 = vst.msk [vmem:[%s273_s26] sm:$0xff] %vm290_vm1, %v488_v63 }
 0x301 PF: > { %s17_s24 = sadd.s32 1, %s692_s24  }
 0x302   : > { %p14_p4 = scmp.ge.s32.totalorder %s17_s24, 4  }
 0x304   :  { %16 = sbr.rel (!%p14_p4) target bundleno = 1 (0x1), region = 78 }

// kernel: decoder_forward.7
= control target key start
LH: loop header
LB: loop body
LE: loop exit
PB: predicated region body
PF: predicated region fallthrough
CT: control target
= control target key end

     0   :  { %s1530_s27 = smov 0   ;;  %s1709_s0 = inlined_call_operand.vmem [shape: f32[16,64], index: 0, kind: input, shape index: {}]   ;;  %s1710_s1 = inlined_call_operand.vmem [shape: f32[2,8,8], index: 1, kind: input, shape index: {}]   ;;  %s1711_s2 = inlined_call_operand.vmem [shape: f32[64,192], index: 2, kind: input, shape index: {}]   ;;  %s1712_s3 = inlined_call_operand.vmem [shape: f32[1,192], index: 3, kind: input, shape index: {}]   ;;  %s1713_s4 = inlined_call_operand.vmem [shape: f32[64,64], index: 4, kind: input, shape index: {}]   ;;  %s1714_s5 = inlined_call_operand.vmem [shape: f32[1,64], index: 5, kind: input, shape index: {}]   ;;  %s1715_s6 = inlined_call_operand.vmem [shape: f32[1,64], index: 6, kind: input, shape index: {}]   ;;  %s1716_s7 = inlined_call_operand.vmem [shape: f32[1,64], index: 7, kind: input, shape index: {}]   ;;  %s1717_s8 = inlined_call_operand.vmem [shape: f32[16,64], index: 8, kind: output, shape index: {}]  }
   0x1 LB: > { %s1292_s28 = sadd.s32 4294967295, %s1473_s27   ;;  %p1296_p0 = scmp.ge.s32.totalorder %s1473_s27, 1  ;;  %s1473_s27 = sphi %s1530_s27, %s18_s27  }
   0x2   : > { %p270_p1 = scmp.lt.s32.totalorder %s1473_s27, 3 }
   0x4   : > { %p271_p2 = pnand %p1296_p0, %p270_p1 }
   0x5   : > { %v320_v0 = vld [vmem:[%s1711_s2 + $0x8] sm:$0xff] (!%p271_p2)  ;;  %v322_v1 = vld [vmem:[%s1711_s2 + $0x18] sm:$0xff] (!%p271_p2)  ;;  %v319_v2 = vld [vmem:[%s1711_s2] sm:$0xff] (!%p271_p2)  ;;  %v1475_v7 = vmov (!%p271_p2), 0.0   ;;  %p306_p3 = scmp.lt.s32.totalorder (!%p271_p2), %s1292_s28, 1  ;;  %vm347_vm0 = vcmask (!%p271_p2), 523264   ;;  %v337_v26 = vlaneseq (!%p271_p2) }
   0x6   : > { %274 = sbr.rel (%p271_p2) target bundleno = 1865 (0x749), region = 52  ;;  %v1403_v3 = vpack.c.bf16 (!%p271_p2), %v322_v1, %v320_v0  ;;  %v321_v4 = vld [vmem:[%s1711_s2 + $0x10] sm:$0xff] (!%p271_p2)  ;;  %v324_v5 = vld [vmem:[%s1711_s2 + $0x28] sm:$0xff] (!%p271_p2)  ;;  %v326_v6 = vld [vmem:[%s1711_s2 + $0x38] sm:$0xff] (!%p271_p2)  ;;  %415 = vmatprep.mubr.f32.mxu0 (!%p271_p2), %v1475_v7  ;;  %1344 = vmatprep.subr.mxu1 (!%p271_p2), %v1475_v7  ;;  %vm1476_vm1 = vmmov (!%p271_p2), 0   ;;  %s1477_s24 = smov (!%p271_p2), 80  }
   0x7   : > { %v1405_v8 = vpack.c.bf16 (!%p271_p2), %v321_v4, %v319_v2  ;;  %v1407_v9 = vpack.c.bf16 (!%p271_p2), %v326_v6, %v324_v5  ;;  %v323_v10 = vld [vmem:[%s1711_s2 + $0x20] sm:$0xff] (!%p271_p2)  ;;  %v325_v11 = vld [vmem:[%s1711_s2 + $0x30] sm:$0xff] (!%p271_p2)  ;;  %v328_v12 = vld [vmem:[%s1711_s2 + $0x48] sm:$0xff] (!%p271_p2)  ;;  %v338_v27 = vshrl.u32 (!%p271_p2), %v337_v26, 7  ;;  %1346 = vmatprep.mubr.msk.f32.mxu1 (!%p271_p2), %vm1476_vm1, %v1475_v7  ;;  %s1478_s25 = smov (!%p271_p2), 112   ;;  %s1479_s26 = smov (!%p271_p2), 64  }
   0x8   : > { %1404 = vmatprep.subr.bf16.mxu0 (!%p271_p2), %v1403_v3  ;;  %v330_v13 = vld [vmem:[%s1711_s2 + $0x58] sm:$0xff] (!%p271_p2)  ;;  %v1409_v14 = vpack.c.bf16 (!%p271_p2), %v325_v11, %v323_v10  ;;  %v327_v16 = vld [vmem:[%s1711_s2 + $0x40] sm:$0xff] (!%p271_p2)  ;;  %v329_v17 = vld [vmem:[%s1711_s2 + $0x50] sm:$0xff] (!%p271_p2)  ;;  %s1480_s29 = smov (!%p271_p2), 96   ;;  %vm461_vm2 = vcmask (!%p271_p2), 130048   ;;  %vm764_vm3 = vcmask (!%p271_p2), 64512  }
   0x9   : > { %1406 = vmatpush1.bf16.msra.mxu0 (!%p271_p2), %v1405_v8  ;;  %v1411_v15 = vpack.c.bf16 (!%p271_p2), %v330_v13, %v328_v12  ;;  %v332_v18 = vld [vmem:[%s1711_s2 + $0x68] sm:$0xff] (!%p271_p2)  ;;  %v334_v19 = vld [vmem:[%s1711_s2 + $0x78] sm:$0xff] (!%p271_p2)  ;;  %v1413_v20 = vpack.c.bf16 (!%p271_p2), %v329_v17, %v327_v16  ;;  %v331_v22 = vld [vmem:[%s1711_s2 + $0x60] sm:$0xff] (!%p271_p2)  ;;  %v339_v28 = vsub.s32 (!%p271_p2), 0, %v338_v27  ;;  %v343_v41 = vsub.s32 (!%p271_p2), 1, %v338_v27  ;;  %s1483_s30 = smov (!%p271_p2), 32  }
   0xa   : > { %1408 = vmatprep.subr.bf16.mxu0 (!%p271_p2), %v1407_v9  ;;  %v1415_v21 = vpack.c.bf16 (!%p271_p2), %v334_v19, %v332_v18  ;;  %v333_v23 = vld [vmem:[%s1711_s2 + $0x70] sm:$0xff] (!%p271_p2)  ;;  %v335_v29 = vld [vmem:[%s1712_s3] sm:$0x3] (!%p271_p2)  ;;  %s1484_s9 = smov (!%p271_p2), 48   ;;  %vm1114_vm4 = vcmask (!%p271_p2), 261120   ;;  %vm1116_vm5 = vcmask (!%p271_p2), 392192  }
   0xb   : > { %v1417_v24 = vpack.c.bf16 (!%p271_p2), %v333_v23, %v331_v22  ;;  %v340_v30 = vrot.slane (!%p271_p2), %v335_v29, %v339_v28  ;;  %v344_v44 = vrot.slane (!%p271_p2), %v335_v29, %v343_v41  ;;  %v1481_v41 = vmov (!%p271_p2), 0.0|0.0  }
   0xd   : > { %s1719_s28 = smov (!%p306_p3, %s1292_s28), 1  ;;  %1410 = vmatpush1.bf16.msra.mxu0 %v1409_v14 }
   0xe   : > { %1412 = vmatprep.subr.bf16.mxu0 %v1411_v15  ;;  %s1592_s19 = sshll.u32 %s1719_s28, 3 }
   0xf   : > { %s309_s22 = scalar_lea.vmem %s1709_s0, %s1592_s19  ;;  %s313_s10 = scalar_lea.vmem %s1710_s1, %s1592_s19 }
  0x10   : > { %v1598_v25 = vld [vmem:[%s309_s22] sm:$0xff]  ;;  %s317_s18 = scalar_lea.vmem %s1717_s8, %s1592_s19 }
  0x11   : > { %1414 = vmatpush1.bf16.msra.mxu0 %v1413_v20  ;;  %v423_v48 = vld [vmem:[%s313_s10] sm:$0xff] }
  0x12   : > { %1416 = vmatprep.subr.bf16.mxu0 %v1415_v21 }
  0x15   : > { %1418 = vmatpush1.bf16.msra.mxu0 %v1417_v24 }
  0x16   : > { %1419 = vmatprep.subr.bf16.mxu0 %v1481_v41 }
  0x18   : > { %1300 = vmatmul.mubr.msk.f32.vlgmr.msra.gmra.mrb[0].mxu0 %vm347_vm0, %v1598_v25 }
  0x19   : > { %1400 = vmatprep.mubr.msk.f32.mxu0 %vm1476_vm1, %v1475_v7 }
  0xeb   : > { %v417_v31 = vpop.f32.mrb[0].mxu0 }
  0xec   : > { %v418_v32 = vadd.f32 %v417_v31, %v340_v30  ;;  %v419_v33 = vpop.f32.mrb[1].mxu0 }
  0xed   : > { %v420_v46 = vadd.f32 %v419_v33, %v344_v44 }
  0xee   : > { %447 = vrot.lane.b32.xlu1 %v418_v32, %s1477_s24  ;;  %443 = vrot.lane.b32.xlu0 %v418_v32, %s1478_s25  ;;  %v422_v34 = vmul.f32 0.25, %v418_v32 }
  0xf2   : > { %459 = vrot.lane.b32.xlu1 %v418_v32, %s1479_s26  ;;  %445 = vrot.lane.b32.xlu0 %v418_v32, %s1480_s29 }
  0xf6   : > { %436 = vrot.lane.b32.xlu1 %v422_v34, %s1478_s25 }
  0xfa   : > { %438 = vrot.lane.b32.xlu1 %v422_v34, %s1480_s29 }
  0xfe   : > { %440 = vrot.lane.b32.xlu1 %v422_v34, %s1477_s24 }
 0x160   : > { %v448_v35 = vpop.permute.xlu1 %447  ;;  %v444_v36 = vpop.permute.xlu0 %443 }
 0x161   : > { %536 = vrot.lane.b32.xlu0 %v444_v36, %s1479_s26 }
 0x164   : > { %v460_v37 = vpop.permute.xlu1 %459  ;;  %v446_v38 = vpop.permute.xlu0 %445 }
 0x165   : > { %1345 = vmatpush3.xpose.msk.msra.mxu1 %vm461_vm2, %v460_v37  ;;  %612 = vrot.lane.b32.xlu0 %v446_v38, %s1479_s26  ;;  %v424_v38 = vld [vmem:[%s1713_s4] sm:$0xff] }
 0x166   : > { %1349 = vmatprep.subr.mxu1 %v1475_v7 }
 0x168   : > { %1347 = vmatmul.mubr.msk.f32.vlgmr.msra.gmra.mrb[0].mxu1 %vm461_vm2, %v422_v34  ;;  %v437_v39 = vpop.permute.xlu1 %436 }
 0x169   : > { %688 = vrot.lane.b32.xlu0 %v448_v35, %s1479_s26  ;;  %1351 = vmatprep.mubr.msk.f32.mxu1 %vm1476_vm1, %v1475_v7 }
 0x16c   : > { %v439_v43 = vpop.permute.xlu1 %438 }
 0x170   : > { %v441_v47 = vpop.permute.xlu1 %440 }
 0x1d3   : > { %v537_v40 = vpop.permute.xlu0 %536 }
 0x1d4   : > { %1350 = vmatpush3.xpose.msk.msra.mxu1 %vm461_vm2, %v537_v40  ;;  %v426_v40 = vld [vmem:[%s1713_s4 + $0x10] sm:$0xff] }
 0x1d5   : > { %1354 = vmatprep.subr.mxu1 %v1475_v7 }
 0x1d7   : > { %v613_v42 = vpop.permute.xlu0 %612  ;;  %1352 = vmatmul.mubr.msk.f32.vlgmr.msra.gmra.mrb[2].mxu1 %vm461_vm2, %v437_v39  ;;  %v425_v39 = vld [vmem:[%s1713_s4 + $0x8] sm:$0xff] }
 0x1d8   : > { %1355 = vmatpush3.xpose.msk.msra.mxu1 %vm461_vm2, %v613_v42  ;;  %1356 = vmatprep.mubr.msk.f32.mxu1 %vm1476_vm1, %v1475_v7  ;;  %v1420_v42 = vpack.c.bf16 %v425_v39, %v424_v38 }
 0x1d9   : > { %1359 = vmatprep.subr.mxu1 %v1475_v7 }
 0x1da   : > { %1421 = vmatpush3.bf16.msra.mxu0 %v1420_v42 }
 0x1db   : > { %v689_v45 = vpop.permute.xlu0 %688  ;;  %1357 = vmatmul.mubr.msk.f32.vlgmr.msra.gmra.mrb[4].mxu1 %vm461_vm2, %v439_v43  ;;  %1422 = vmatprep.subr.bf16.mxu0 %v1481_v41 }
 0x1dc   : > { %1360 = vmatpush3.xpose.msk.msra.mxu1 %vm461_vm2, %v689_v45  ;;  %1361 = vmatprep.mubr.msk.f32.mxu1 %vm1476_vm1, %v1475_v7 }
 0x1dd   : > { %1364 = vmatprep.subr.mxu1 %v1475_v7 }
 0x1df   : > { %1362 = vmatmul.mubr.msk.f32.vlgmr.msra.gmra.mrb[6].mxu1 %vm461_vm2, %v441_v47  ;;  %v429_v47 = vld [vmem:[%s1713_s4 + $0x28] sm:$0xff] }
 0x1e0   : > { %1365 = vmatpush3.msra.mxu1 %v420_v46  ;;  %1366 = vmatprep.mubr.msk.f32.mxu1 %vm1476_vm1, %v1475_v7 }
 0x1e1   : > { %1369 = vmatprep.subr.mxu1 %v1475_v7 }
 0x23b   : > { %v532_v49 = vpop.f32.mrb[0].mxu1 }
 0x23c   : > { %v533_v50 = vadd.f32 %v532_v49, %v423_v48  ;;  %v1348_v51 = vpop.f32.mrb[1].mxu1  ;;  %v430_v49 = vld [vmem:[%s1713_s4 + $0x30] sm:$0xff] }
 0x23e   : > { %v765_v52 = vsel %vm764_vm3, %v533_v50, -inf }
 0x23f   : > { %766 = vmax.xlane.f32.xlu0 %v765_v52 }
 0x2aa   : > { %v608_v53 = vpop.f32.mrb[2].mxu1 }
 0x2ab   : > { %v609_v54 = vadd.f32 %v608_v53, %v423_v48  ;;  %v1353_v55 = vpop.f32.mrb[3].mxu1 }
 0x2ad   : > { %v768_v56 = vsel %vm764_vm3, %v609_v54, -inf }
 0x2ae   : > { %769 = vmax.xlane.f32.xlu1 %v768_v56  ;;  %v684_v57 = vpop.f32.mrb[4].mxu1 }
 0x2af   : > { %v685_v58 = vadd.f32 %v684_v57, %v423_v48  ;;  %v1358_v59 = vpop.f32.mrb[5].mxu1 }
 0x2b1   : > { %v771_v60 = vsel %vm764_vm3, %v685_v58, -inf }
 0x2b2   : > { %772 = vmax.xlane.f32.xlu0 %v771_v60  ;;  %v760_v61 = vpop.f32.mrb[6].mxu1 }
 0x2b3   : > { %v761_v62 = vadd.f32 %v760_v61, %v423_v48  ;;  %v1363_v63 = vpop.f32.mrb[7].mxu1 }
 0x2b5   : > { %v774_v0 = vsel %vm764_vm3, %v761_v62, -inf }
 0x2b6   : > { %775 = vmax.xlane.f32.xlu0 %v774_v0  ;;  %v1313_v0 = vld [vmem:[%s1714_s5] ss:$0 sm:$0xff] }
 0x2bf   : > { %450 = vrot.lane.b32.xlu1 %v420_v46, %s1478_s25 }
 0x2cc   : > { %v767_v1 = vpop.xlane.xlu0 %766 }
 0x2cd   : > { %v777_v2 = vsub.f32 %v533_v50, %v767_v1  ;;  %v431_v50 = vld [vmem:[%s1713_s4 + $0x38] sm:$0xff] }
 0x2ce   : > { %v1429_v51 = vpack.c.bf16 %v431_v50, %v430_v49 }
 0x2cf   : > { %v781_v3 = vmul.f32 1.442695, %v777_v2 }
 0x2d1   : > { %1449 = vpow2.f32 %v781_v3 }
 0x2db   : > { %v1450_v4 = vpop.eup %1449 }
 0x2dc   : > { %v789_v5 = vsel %vm764_vm3, %v1450_v4, 0.0 }
 0x2e3   : > { %790 = vadd.xlane.f32.xlu1 %v789_v5 }
 0x33b   : > { %v770_v6 = vpop.xlane.xlu1 %769 }
 0x33c   : > { %v778_v8 = vsub.f32 %v609_v54, %v770_v6 }
 0x33e   : > { %v783_v9 = vmul.f32 1.442695, %v778_v8 }
 0x33f   : > { %v773_v10 = vpop.xlane.xlu0 %772  ;;  %v451_v22 = vpop.permute.xlu1 %450 }
 0x340   : > { %1451 = vpow2.f32 %v783_v9  ;;  %v779_v11 = vsub.f32 %v685_v58, %v773_v10 }
 0x342   : > { %v785_v12 = vmul.f32 1.442695, %v779_v11 }
 0x343   : > { %v776_v13 = vpop.xlane.xlu0 %775 }
 0x344   : > { %1453 = vpow2.f32 %v785_v12  ;;  %v780_v14 = vsub.f32 %v761_v62, %v776_v13 }
 0x346   : > { %v787_v15 = vmul.f32 1.442695, %v780_v14 }
 0x348   : > { %1455 = vpow2.f32 %v787_v15 }
 0x34a   : > { %v1452_v16 = vpop.eup %1451 }
 0x34b   : > { %v792_v17 = vsel %vm764_vm3, %v1452_v16, 0.0 }
 0x34c   : > { %793 = vadd.xlane.f32.xlu0 %v792_v17  ;;  %v1316_v17 = vld [vmem:[%s1716_s7] ss:$0 sm:$0xff] }
 0x34e   : > { %v1454_v18 = vpop.eup %1453 }
 0x34f   : > { %v795_v19 = vsel %vm764_vm3, %v1454_v18, 0.0 }
 0x350   : > { %796 = vadd.xlane.f32.xlu1 %v795_v19 }
 0x352   : > { %v1456_v20 = vpop.eup %1455 }
 0x353   : > { %v798_v21 = vsel %vm764_vm3, %v1456_v20, 0.0 }
 0x354   : > { %799 = vadd.xlane.f32.xlu0 %v798_v21 }
 0x361   : > { %456 = vrot.lane.b32.xlu1 %v420_v46, %s1477_s24 }
 0x36a   : > { %453 = vrot.lane.b32.xlu0 %v420_v46, %s1480_s29  ;;  %v428_v46 = vld [vmem:[%s1713_s4 + $0x20] sm:$0xff]  ;;  %s1482_s29 = smov 16  }
 0x36b   : > { %v1426_v48 = vpack.c.bf16 %v429_v47, %v428_v46 }
 0x370   : > { %v791_v23 = vpop.xlane.xlu1 %790 }
 0x371   : > { %1457 = vrcp.f32 %v791_v23 }
 0x37b   : > { %v1458_v24 = vpop.eup %1457 }
 0x37c   : > { %v805_v26 = vmul.f32 %v1458_v24, %v1450_v4 }
 0x37e   : > { %1367 = vmatmul.mubr.msk.f32.vlgmr.msra.gmra.mrb[8].mxu1 %vm764_vm3, %v805_v26 }
 0x37f   : > { %1370 = vmatpush3.msra.mxu1 %v451_v22  ;;  %1371 = vmatprep.mubr.msk.f32.mxu1 %vm1476_vm1, %v1475_v7 }
 0x380   : > { %1374 = vmatprep.subr.mxu1 %v1475_v7 }
 0x3d9   : > { %v794_v27 = vpop.xlane.xlu0 %793 }
 0x3da   : > { %1459 = vrcp.f32 %v794_v27 }
 0x3dd   : > { %v797_v28 = vpop.xlane.xlu1 %796 }
 0x3de   : > { %1461 = vrcp.f32 %v797_v28 }
 0x3e1   : > { %v800_v29 = vpop.xlane.xlu0 %799  ;;  %v457_v35 = vpop.permute.xlu1 %456 }
 0x3e2   : > { %1463 = vrcp.f32 %v800_v29 }
 0x3e4   : > { %v1460_v30 = vpop.eup %1459 }
 0x3e5   : > { %v806_v31 = vmul.f32 %v1460_v30, %v1452_v16  ;;  %v454_v32 = vpop.permute.xlu0 %453 }
 0x3e7   : > { %1372 = vmatmul.mubr.msk.f32.vlgmr.msra.gmra.mrb[10].mxu1 %vm764_vm3, %v806_v31 }
 0x3e8   : > { %v1462_v33 = vpop.eup %1461  ;;  %1375 = vmatpush3.msra.mxu1 %v454_v32  ;;  %1376 = vmatprep.mubr.msk.f32.mxu1 %vm1476_vm1, %v1475_v7 }
 0x3e9   : > { %v807_v34 = vmul.f32 %v1462_v33, %v1454_v18  ;;  %1379 = vmatprep.subr.mxu1 %v1475_v7 }
 0x3eb   : > { %1377 = vmatmul.mubr.msk.f32.vlgmr.msra.gmra.mrb[12].mxu1 %vm764_vm3, %v807_v34 }
 0x3ec   : > { %v1464_v36 = vpop.eup %1463  ;;  %1380 = vmatpush3.msra.mxu1 %v457_v35  ;;  %1381 = vmatprep.mubr.msk.f32.mxu1 %vm1476_vm1, %v1475_v7  ;;  %v427_v7 = vld [vmem:[%s1713_s4 + $0x18] sm:$0xff] }
 0x3ed   : > { %v808_v37 = vmul.f32 %v1464_v36, %v1456_v20  ;;  %v1423_v43 = vpack.c.bf16 %v427_v7, %v426_v40 }
 0x3ef   : > { %1382 = vmatmul.mubr.msk.f32.vlgmr.msra.gmra.mrb[14].mxu1 %vm764_vm3, %v808_v37  ;;  %1424 = vmatpush3.bf16.msra.mxu0 %v1423_v43 }
 0x3f0   : > { %1425 = vmatprep.subr.bf16.mxu0 %v1481_v41 }
 0x3f3   : > { %1427 = vmatpush3.bf16.msra.mxu0 %v1426_v48 }
 0x3f4   : > { %1428 = vmatprep.subr.bf16.mxu0 %v1481_v41 }
 0x3f7   : > { %1430 = vmatpush3.bf16.msra.mxu0 %v1429_v51 }
 0x451   : > { %v878_v44 = vpop.f32.mrb[8].mxu1 }
 0x452   : > { %v1368_v45 = vpop.f32.mrb[9].mxu1 }
 0x4ba   : > { %v951_v52 = vpop.f32.mrb[10].mxu1 }
 0x4bb   : > { %1102 = vrot.lane.b32.xlu1 %v951_v52, %s1482_s29  ;;  %v1373_v53 = vpop.f32.mrb[11].mxu1 }
 0x4be   : > { %v1024_v54 = vpop.f32.mrb[12].mxu1 }
 0x4bf   : > { %1106 = vrot.lane.b32.xlu0 %v1024_v54, %s1483_s30  ;;  %v1378_v55 = vpop.f32.mrb[13].mxu1 }
 0x4c2   : > { %v1097_v56 = vpop.f32.mrb[14].mxu1 }
 0x4c3   : > { %1110 = vrot.lane.b32.xlu1 %v1097_v56, %s1484_s9  ;;  %v1383_v57 = vpop.f32.mrb[15].mxu1 }
 0x52d   : > { %v1103_v58 = vpop.permute.xlu1 %1102 }
 0x52e   : > { %v1113_v60 = vsel %vm461_vm2, %v878_v44, %v1103_v58 }
 0x531   : > { %v1107_v59 = vpop.permute.xlu0 %1106 }
 0x532   : > { %v1115_v61 = vsel %vm1114_vm4, %v1113_v60, %v1107_v59 }
 0x535   : > { %v1111_v62 = vpop.permute.xlu1 %1110 }
 0x536   : > { %v1117_v63 = vsel %vm1116_vm5, %v1115_v61, %v1111_v62 }
 0x537   : > { %1401 = vmatmul.mubr.msk.f32.vlgmr.msra.gmra.mrb[2].mxu0 %vm347_vm0, %v1117_v63 }
 0x60a   : > { %v1193_v1 = vpop.f32.mrb[2].mxu0 }
 0x60b   : > { %v1194_v2 = vadd.f32 %v1313_v0, %v1193_v1  ;;  %v1402_v3 = vpop.f32.mrb[3].mxu0 }
 0x60d   : > { %v1197_v4 = vadd.f32 %v1194_v2, %v1598_v25  ;;  %v1315_v25 = vld [vmem:[%s1715_s6] ss:$0 sm:$0xff] }
 0x60f   : > { %v1198_v5 = vsel %vm347_vm0, %v1197_v4, 0.0 }
 0x610   : > { %1199 = vadd.xlane.f32.xlu0 %v1198_v5 }
 0x69d   : > { %v1200_v6 = vpop.xlane.xlu0 %1199 }
 0x69e   : > { %v1202_v8 = vmul.f32 0.015625, %v1200_v6 }
 0x6a0   : > { %v1203_v9 = vsub.f32 %v1197_v4, %v1202_v8 }
 0x6a2   : > { %v1204_v10 = vmul.f32 %v1203_v9, %v1203_v9 }
 0x6a4   : > { %v1205_v11 = vsel %vm347_vm0, %v1204_v10, 0.0 }
 0x6a5   : > { %1206 = vadd.xlane.f32.xlu1 %v1205_v11 }
 0x732   : > { %v1207_v12 = vpop.xlane.xlu1 %1206 }
 0x733   : > { %v1208_v13 = vmul.f32 0.015625, %v1207_v12 }
 0x735   : > { %v1209_v14 = vadd.f32 1e-05, %v1208_v13 }
 0x737   : > { %1465 = vrsqrt.f32 %v1209_v14 }
 0x741   : > { %v1466_v15 = vpop.eup %1465 }
 0x742   : > { %v1211_v16 = vmul.f32 %v1466_v15, %v1203_v9 }
 0x744   : > { %v1218_v18 = vmul.f32 %v1315_v25, %v1211_v16 }
 0x746   : > { %v1225_v19 = vadd.f32 %v1316_v17, %v1218_v18 }
 0x748   : > { %1226 = vst.msk [vmem:[%s317_s18] sm:$0xff] %vm347_vm0, %v1225_v19 }
 0x749 PF: > { %s18_s27 = sadd.s32 1, %s1473_s27  }
 0x74a   : > { %p15_p4 = scmp.ge.s32.totalorder %s18_s27, 4  }
 0x74c   :  { %17 = sbr.rel (!%p15_p4) target bundleno = 1 (0x1), region = 85 }

// kernel: decoder_forward.8
= control target key start
LH: loop header
LB: loop body
LE: loop exit
PB: predicated region body
PF: predicated region fallthrough
CT: control target
= control target key end

     0   :  { %s1792_s17 = smov 0   ;;  %s2007_s0 = inlined_call_operand.vmem [shape: f32[16,64], index: 0, kind: input, shape index: {}]   ;;  %s2008_s1 = inlined_call_operand.vmem [shape: f32[16,64], index: 1, kind: input, shape index: {}]   ;;  %s2009_s2 = inlined_call_operand.vmem [shape: f32[2,8,8], index: 2, kind: input, shape index: {}]   ;;  %s2010_s3 = inlined_call_operand.vmem [shape: f32[64,64], index: 3, kind: input, shape index: {}]   ;;  %s2011_s4 = inlined_call_operand.vmem [shape: f32[1,64], index: 4, kind: input, shape index: {}]   ;;  %s2012_s5 = inlined_call_operand.vmem [shape: f32[64,128], index: 5, kind: input, shape index: {}]   ;;  %s2013_s6 = inlined_call_operand.vmem [shape: f32[1,128], index: 6, kind: input, shape index: {}]   ;;  %s2014_s7 = inlined_call_operand.vmem [shape: f32[64,64], index: 7, kind: input, shape index: {}]   ;;  %s2015_s8 = inlined_call_operand.vmem [shape: f32[1,64], index: 8, kind: input, shape index: {}]   ;;  %s2016_s9 = inlined_call_operand.vmem [shape: f32[1,64], index: 9, kind: input, shape index: {}]   ;;  %s2017_s10 = inlined_call_operand.vmem [shape: f32[1,64], index: 10, kind: input, shape index: {}]   ;;  %s2018_s11 = inlined_call_operand.vmem [shape: f32[16,64], index: 11, kind: output, shape index: {}]  }
   0x1 LB: > { %s1471_s18 = sadd.s32 4294967295, %s1720_s17   ;;  %p1475_p0 = scmp.ge.s32.totalorder %s1720_s17, 1  ;;  %s1720_s17 = sphi %s1792_s17, %s21_s17  }
   0x2   : > { %p354_p1 = scmp.lt.s32.totalorder %s1720_s17, 3 }
   0x4   : > { %p355_p2 = pnand %p1475_p0, %p354_p1 }
   0x5   : > { %v508_v0 = vld [vmem:[%s2012_s5] sm:$0xff] (!%p355_p2)  ;;  %v509_v1 = vld [vmem:[%s2012_s5 + $0x8] sm:$0xff] (!%p355_p2)  ;;  %v1722_v3 = vmov (!%p355_p2), 0.0|0.0   ;;  %v510_v6 = vld [vmem:[%s2012_s5 + $0x10] sm:$0xff] (!%p355_p2)  ;;  %p1822_p3 = scmp.lt.s32.totalorder (!%p355_p2), %s1471_s18, 1  ;;  %vm1723_vm0 = vmmov (!%p355_p2), 0  }
   0x6   : > { %358 = sbr.rel (%p355_p2) target bundleno = 1751 (0x6d7), region = 64  ;;  %v418_v2 = vld [vmem:[%s2010_s3] sm:$0xff] (!%p355_p2)  ;;  %1654 = vmatprep.subr.bf16.mxu1 (!%p355_p2), %v1722_v3  ;;  %1642 = vmatprep.subr.bf16.mxu0 (!%p355_p2), %v1722_v3  ;;  %v1655_v4 = vpack.c.bf16 (!%p355_p2), %v509_v1, %v508_v0  ;;  %v419_v5 = vld [vmem:[%s2010_s3 + $0x8] sm:$0xff] (!%p355_p2)  ;;  %v511_v7 = vld [vmem:[%s2012_s5 + $0x18] sm:$0xff] (!%p355_p2)  ;;  %v1724_v11 = vmov (!%p355_p2), 0.0   ;;  %vm433_vm1 = vcmask (!%p355_p2), 523264  }
   0x7   : > { %v1643_v8 = vpack.c.bf16 (!%p355_p2), %v419_v5, %v418_v2  ;;  %v420_v9 = vld [vmem:[%s2010_s3 + $0x10] sm:$0xff] (!%p355_p2)  ;;  %v421_v10 = vld [vmem:[%s2010_s3 + $0x18] sm:$0xff] (!%p355_p2)  ;;  %1580 = vmatprep.mubr.msk.f32.mxu1 (!%p355_p2), %vm1723_vm0, %v1724_v11  ;;  %1561 = vmatprep.mubr.msk.f32.mxu0 (!%p355_p2), %vm1723_vm0, %v1724_v11  ;;  %v1658_v12 = vpack.c.bf16 (!%p355_p2), %v511_v7, %v510_v6  ;;  %v512_v14 = vld [vmem:[%s2012_s5 + $0x20] sm:$0xff] (!%p355_p2)  ;;  %vm622_vm2 = vcmask (!%p355_p2), 130048   ;;  %s1725_s28 = smov (!%p355_p2), 96   ;;  %s1726_s29 = smov (!%p355_p2), 112  }
   0x8   : > { %1656 = vmatpush3.bf16.msra.mxu1 (!%p355_p2), %v1655_v4  ;;  %v1646_v13 = vpack.c.bf16 (!%p355_p2), %v421_v10, %v420_v9  ;;  %v513_v15 = vld [vmem:[%s2012_s5 + $0x28] sm:$0xff] (!%p355_p2)  ;;  %v422_v16 = vld [vmem:[%s2010_s3 + $0x20] sm:$0xff] (!%p355_p2)  ;;  %v514_v20 = vld [vmem:[%s2012_s5 + $0x30] sm:$0xff] (!%p355_p2)  ;;  %s1727_s30 = smov (!%p355_p2), 80   ;;  %vm919_vm3 = vcmask (!%p355_p2), 64512   ;;  %s1728_s15 = smov (!%p355_p2), 64  }
   0x9   : > { %1644 = vmatpush3.bf16.msra.mxu0 (!%p355_p2), %v1643_v8  ;;  %1657 = vmatprep.subr.bf16.mxu1 (!%p355_p2), %v1722_v3  ;;  %v423_v17 = vld [vmem:[%s2010_s3 + $0x28] sm:$0xff] (!%p355_p2)  ;;  %v1661_v18 = vpack.c.bf16 (!%p355_p2), %v513_v15, %v512_v14  ;;  %v515_v21 = vld [vmem:[%s2012_s5 + $0x38] sm:$0xff] (!%p355_p2)  ;;  %v424_v22 = vld [vmem:[%s2010_s3 + $0x30] sm:$0xff] (!%p355_p2)  ;;  %s1730_s19 = smov (!%p355_p2), 32   ;;  %s1731_s20 = smov (!%p355_p2), 48   ;;  %vm1281_vm4 = vcmask (!%p355_p2), 261120  }
   0xa   : > { %1645 = vmatprep.subr.bf16.mxu0 (!%p355_p2), %v1722_v3  ;;  %v1649_v19 = vpack.c.bf16 (!%p355_p2), %v423_v17, %v422_v16  ;;  %v425_v23 = vld [vmem:[%s2010_s3 + $0x38] sm:$0xff] (!%p355_p2)  ;;  %v1664_v24 = vpack.c.bf16 (!%p355_p2), %v515_v21, %v514_v20  ;;  %v1482_v28 = vld [vmem:[%s2013_s6] ss:$0 sm:$0xff] (!%p355_p2)  ;;  %vm1283_vm5 = vcmask (!%p355_p2), 392192  }
   0xb   : > { %v1652_v25 = vpack.c.bf16 (!%p355_p2), %v425_v23, %v424_v22  ;;  %v1480_v29 = vld [vmem:[%s2011_s4] ss:$0 sm:$0xff] (!%p355_p2) }
   0xc   : > { %1659 = vmatpush3.bf16.msra.mxu1 (!%p355_p2), %v1658_v12 }
   0xd   : > { %s2021_s18 = smov (!%p1822_p3, %s1471_s18), 1  ;;  %1647 = vmatpush3.bf16.msra.mxu0 %v1646_v13  ;;  %1660 = vmatprep.subr.bf16.mxu1 %v1722_v3 }
   0xe   : > { %1648 = vmatprep.subr.bf16.mxu0 %v1722_v3  ;;  %s1868_s16 = sshll.u32 %s2021_s18, 3 }
   0xf   : > { %s407_s21 = scalar_lea.vmem %s2008_s1, %s1868_s16  ;;  %s403_s24 = scalar_lea.vmem %s2007_s0, %s1868_s16 }
  0x10   : > { %1662 = vmatpush3.bf16.msra.mxu1 %v1661_v18  ;;  %v417_v26 = vld [vmem:[%s407_s21] sm:$0xff]  ;;  %s411_s12 = scalar_lea.vmem %s2009_s2, %s1868_s16 }
  0x11   : > { %1650 = vmatpush3.bf16.msra.mxu0 %v1649_v19  ;;  %1663 = vmatprep.subr.bf16.mxu1 %v1722_v3  ;;  %v1880_v27 = vld [vmem:[%s403_s24] sm:$0xff] }
  0x12   : > { %1651 = vmatprep.subr.bf16.mxu0 %v1722_v3  ;;  %v596_v43 = vld [vmem:[%s411_s12] sm:$0xff] }
  0x14   : > { %1665 = vmatpush3.bf16.msra.mxu1 %v1664_v24 }
  0x15   : > { %1653 = vmatpush3.bf16.msra.mxu0 %v1652_v25  ;;  %1583 = vmatprep.subr.mxu1 %v1724_v11 }
  0x16   : > { %1603 = vmatprep.subr.mxu0 %v1724_v11 }
  0x17   : > { %1581 = vmatmul.mubr.msk.f32.vlgmr.msra.gmra.mrb[0].mxu1 %vm433_vm1, %v417_v26 }
  0x18   : > { %1562 = vmatmul.mubr.msk.f32.vlgmr.msra.gmra.mrb[0].mxu0 %vm433_vm1, %v1880_v27  ;;  %1585 = vmatprep.mubr.msk.f32.mxu1 %vm1723_vm0, %v1724_v11 }
  0x19   : > { %1605 = vmatprep.mubr.msk.f32.mxu0 %vm1723_vm0, %v1724_v11 }
  0xea   : > { %v592_v30 = vpop.f32.mrb[0].mxu1 }
  0xeb   : > { %v593_v31 = vadd.f32 %v1482_v28, %v592_v30  ;;  %v503_v32 = vpop.f32.mrb[0].mxu0  ;;  %v1582_v33 = vpop.f32.mrb[1].mxu1 }
  0xec   : > { %v504_v34 = vadd.f32 %v1480_v29, %v503_v32  ;;  %v1563_v35 = vpop.f32.mrb[1].mxu0 }
  0xed   : > { %618 = vrot.lane.b32.xlu1 %v593_v31, %s1725_s28  ;;  %616 = vrot.lane.b32.xlu0 %v593_v31, %s1726_s29  ;;  %v597_v35 = vld [vmem:[%s2014_s7] sm:$0xff] }
  0xee   : > { %v507_v36 = vmul.f32 0.25, %v504_v34  ;;  %1584 = vmatpush3.xpose.msk.msra.mxu1 %vm622_vm2, %v593_v31 }
  0xef   : > { %1588 = vmatprep.subr.mxu1 %v1724_v11 }
  0xf1   : > { %1586 = vmatmul.mubr.msk.f32.vlgmr.msra.gmra.mrb[2].mxu1 %vm622_vm2, %v507_v36  ;;  %611 = vrot.lane.b32.xlu1 %v507_v36, %s1725_s28  ;;  %s415_s28 = scalar_lea.vmem %s2018_s11, %s1868_s16 }
  0xf2   : > { %609 = vrot.lane.b32.xlu0 %v507_v36, %s1726_s29  ;;  %1590 = vmatprep.mubr.msk.f32.mxu1 %vm1723_vm0, %v1724_v11 }
  0xf5   : > { %613 = vrot.lane.b32.xlu1 %v507_v36, %s1727_s30  ;;  %v598_v36 = vld [vmem:[%s2014_s7 + $0x8] sm:$0xff] }
  0xf6   : > { %620 = vrot.lane.b32.xlu0 %v593_v31, %s1727_s30 }
 0x15f   : > { %v1902_v37 = vpop.permute.xlu0 %616  ;;  %v1904_v38 = vpop.permute.xlu1 %618 }
 0x160   : > { %1589 = vmatpush3.xpose.msk.msra.mxu1 %vm622_vm2, %v1902_v37 }
 0x161   : > { %1593 = vmatprep.subr.mxu1 %v1724_v11 }
 0x163   : > { %v612_v40 = vpop.permute.xlu1 %611 }
 0x164   : > { %v610_v39 = vpop.permute.xlu0 %609 }
 0x165   : > { %1591 = vmatmul.mubr.msk.f32.vlgmr.msra.gmra.mrb[4].mxu1 %vm622_vm2, %v610_v39 }
 0x166   : > { %1594 = vmatpush3.xpose.msk.msra.mxu1 %vm622_vm2, %v1904_v38  ;;  %1595 = vmatprep.mubr.msk.f32.mxu1 %vm1723_vm0, %v1724_v11 }
 0x167   : > { %1598 = vmatprep.subr.mxu1 %v1724_v11  ;;  %v614_v42 = vpop.permute.xlu1 %613 }
 0x168   : > { %v1915_v41 = vpop.permute.xlu0 %620 }
 0x169   : > { %1596 = vmatmul.mubr.msk.f32.vlgmr.msra.gmra.mrb[6].mxu1 %vm622_vm2, %v612_v40 }
 0x16a   : > { %1599 = vmatpush3.xpose.msk.msra.mxu1 %vm622_vm2, %v1915_v41  ;;  %1600 = vmatprep.mubr.msk.f32.mxu1 %vm1723_vm0, %v1724_v11 }
 0x16b   : > { %1608 = vmatprep.subr.mxu1 %v1724_v11 }
 0x16d   : > { %1601 = vmatmul.mubr.msk.f32.vlgmr.msra.gmra.mrb[8].mxu1 %vm622_vm2, %v614_v42  ;;  %v601_v42 = vld [vmem:[%s2014_s7 + $0x20] sm:$0xff] }
 0x16e   : > { %1610 = vmatprep.mubr.msk.f32.mxu1 %vm1723_vm0, %v1724_v11 }
 0x1c4   : > { %v693_v44 = vpop.f32.mrb[2].mxu1 }
 0x1c5   : > { %v694_v45 = vadd.f32 %v693_v44, %v596_v43  ;;  %v1587_v46 = vpop.f32.mrb[3].mxu1 }
 0x1c6   : > { %v604_v46 = vld [vmem:[%s2014_s7 + $0x38] sm:$0xff] }
 0x1c7   : > { %v920_v47 = vsel %vm919_vm3, %v694_v45, -inf }
 0x1c8   : > { %921 = vmax.xlane.f32.xlu0 %v920_v47 }
 0x238   : > { %v767_v48 = vpop.f32.mrb[4].mxu1 }
 0x239   : > { %v768_v49 = vadd.f32 %v767_v48, %v596_v43  ;;  %v1592_v50 = vpop.f32.mrb[5].mxu1 }
 0x23b   : > { %v923_v51 = vsel %vm919_vm3, %v768_v49, -inf }
 0x23c   : > { %924 = vmax.xlane.f32.xlu1 %v923_v51  ;;  %v841_v52 = vpop.f32.mrb[6].mxu1 }
 0x23d   : > { %v842_v53 = vadd.f32 %v841_v52, %v596_v43  ;;  %v1597_v54 = vpop.f32.mrb[7].mxu1 }
 0x23f   : > { %v926_v55 = vsel %vm919_vm3, %v842_v53, -inf }
 0x240   : > { %927 = vmax.xlane.f32.xlu0 %v926_v55  ;;  %v915_v56 = vpop.f32.mrb[8].mxu1 }
 0x241   : > { %v916_v57 = vadd.f32 %v915_v56, %v596_v43  ;;  %v1602_v58 = vpop.f32.mrb[9].mxu1  ;;  %v602_v43 = vld [vmem:[%s2014_s7 + $0x28] sm:$0xff] }
 0x242   : > { %v1673_v44 = vpack.c.bf16 %v602_v43, %v601_v42 }
 0x243   : > { %v929_v59 = vsel %vm919_vm3, %v916_v57, -inf }
 0x244   : > { %930 = vmax.xlane.f32.xlu0 %v929_v59  ;;  %v1496_v59 = vld [vmem:[%s2015_s8] ss:$0 sm:$0xff] }
 0x24d   : > { %964 = vrot.lane.b32.xlu1 %v593_v31, %s1728_s15 }
 0x255   : > { %v922_v60 = vpop.xlane.xlu0 %921 }
 0x256   : > { %v932_v61 = vsub.f32 %v694_v45, %v922_v60  ;;  %v603_v45 = vld [vmem:[%s2014_s7 + $0x30] sm:$0xff] }
 0x257   : > { %v1676_v47 = vpack.c.bf16 %v604_v46, %v603_v45 }
 0x258   : > { %v936_v62 = vmul.f32 1.442695, %v932_v61 }
 0x25a   : > { %1696 = vpow2.f32 %v936_v62 }
 0x264   : > { %v1697_v63 = vpop.eup %1696 }
 0x265   : > { %v944_v0 = vsel %vm919_vm3, %v1697_v63, 0.0 }
 0x271   : > { %945 = vadd.xlane.f32.xlu1 %v944_v0 }
 0x2c9   : > { %v925_v1 = vpop.xlane.xlu1 %924 }
 0x2ca   : > { %v933_v2 = vsub.f32 %v768_v49, %v925_v1 }
 0x2cc   : > { %v938_v4 = vmul.f32 1.442695, %v933_v2 }
 0x2cd   : > { %v965_v5 = vpop.permute.xlu1 %964  ;;  %v928_v6 = vpop.xlane.xlu0 %927 }
 0x2ce   : > { %1698 = vpow2.f32 %v938_v4  ;;  %v934_v7 = vsub.f32 %v842_v53, %v928_v6  ;;  %1604 = vmatpush3.msra.mxu0 %v965_v5 }
 0x2cf   : > { %1613 = vmatprep.subr.mxu0 %v1724_v11 }
 0x2d0   : > { %v940_v8 = vmul.f32 1.442695, %v934_v7 }
 0x2d1   : > { %v931_v9 = vpop.xlane.xlu0 %930 }
 0x2d2   : > { %1700 = vpow2.f32 %v940_v8  ;;  %v935_v10 = vsub.f32 %v916_v57, %v931_v9 }
 0x2d4   : > { %v942_v12 = vmul.f32 1.442695, %v935_v10 }
 0x2d6   : > { %1702 = vpow2.f32 %v942_v12 }
 0x2d8   : > { %v1699_v13 = vpop.eup %1698 }
 0x2d9   : > { %v947_v14 = vsel %vm919_vm3, %v1699_v13, 0.0 }
 0x2da   : > { %948 = vadd.xlane.f32.xlu0 %v947_v14 }
 0x2dc   : > { %v1701_v15 = vpop.eup %1700 }
 0x2dd   : > { %v950_v16 = vsel %vm919_vm3, %v1701_v15, 0.0 }
 0x2de   : > { %951 = vadd.xlane.f32.xlu1 %v950_v16 }
 0x2e0   : > { %v1703_v17 = vpop.eup %1702 }
 0x2e1   : > { %v953_v18 = vsel %vm919_vm3, %v1703_v17, 0.0 }
 0x2e2   : > { %954 = vadd.xlane.f32.xlu0 %v953_v18 }
 0x2ef   : > { %1116 = vrot.lane.b32.xlu1 %v1904_v38, %s1728_s15  ;;  %v1667_v38 = vpack.c.bf16 %v598_v36, %v597_v35 }
 0x2f3   : > { %1192 = vrot.lane.b32.xlu1 %v1915_v41, %s1728_s15 }
 0x2f8   : > { %1040 = vrot.lane.b32.xlu0 %v1902_v37, %s1728_s15  ;;  %v599_v37 = vld [vmem:[%s2014_s7 + $0x10] sm:$0xff]  ;;  %s1729_s15 = smov 16  }
 0x2fe   : > { %v946_v19 = vpop.xlane.xlu1 %945 }
 0x2ff   : > { %1704 = vrcp.f32 %v946_v19 }
 0x309   : > { %v1705_v20 = vpop.eup %1704 }
 0x30a   : > { %v960_v21 = vmul.f32 %v1705_v20, %v1697_v63 }
 0x30c   : > { %1606 = vmatmul.mubr.msk.f32.vlgmr.msra.gmra.mrb[2].mxu0 %vm919_vm3, %v960_v21 }
 0x30d   : > { %1615 = vmatprep.mubr.msk.f32.mxu0 %vm1723_vm0, %v1724_v11 }
 0x367   : > { %v949_v22 = vpop.xlane.xlu0 %948 }
 0x368   : > { %1706 = vrcp.f32 %v949_v22 }
 0x36b   : > { %v952_v23 = vpop.xlane.xlu1 %951 }
 0x36c   : > { %1708 = vrcp.f32 %v952_v23 }
 0x36f   : > { %v1117_v24 = vpop.permute.xlu1 %1116  ;;  %v955_v25 = vpop.xlane.xlu0 %954 }
 0x370   : > { %1710 = vrcp.f32 %v955_v25  ;;  %1614 = vmatpush3.msra.mxu0 %v1117_v24 }
 0x371   : > { %1666 = vmatprep.subr.bf16.mxu0 %v1722_v3 }
 0x372   : > { %v1707_v26 = vpop.eup %1706 }
 0x373   : > { %v961_v28 = vmul.f32 %v1707_v26, %v1699_v13  ;;  %v1041_v29 = vpop.permute.xlu0 %1040  ;;  %v1193_v30 = vpop.permute.xlu1 %1192  ;;  %v1499_v13 = vld [vmem:[%s2017_s10] ss:$0 sm:$0xff] }
 0x374   : > { %1609 = vmatpush3.msra.mxu1 %v1041_v29 }
 0x375   : > { %1611 = vmatmul.mubr.msk.f32.vlgmr.msra.gmra.mrb[10].mxu1 %vm919_vm3, %v961_v28  ;;  %1618 = vmatprep.subr.mxu1 %v1724_v11 }
 0x376   : > { %v1709_v31 = vpop.eup %1708  ;;  %1619 = vmatpush3.msra.mxu1 %v1193_v30  ;;  %1620 = vmatprep.mubr.msk.f32.mxu1 %vm1723_vm0, %v1724_v11 }
 0x377   : > { %v962_v32 = vmul.f32 %v1709_v31, %v1701_v15 }
 0x379   : > { %1616 = vmatmul.mubr.msk.f32.vlgmr.msra.gmra.mrb[4].mxu0 %vm919_vm3, %v962_v32 }
 0x37a   : > { %v1711_v33 = vpop.eup %1710  ;;  %1639 = vmatprep.mubr.msk.f32.mxu0 %vm1723_vm0, %v1724_v11  ;;  %v600_v11 = vld [vmem:[%s2014_s7 + $0x18] sm:$0xff]  ;;  %1668 = vmatpush3.bf16.msra.mxu0 %v1667_v38 }
 0x37b   : > { %v963_v34 = vmul.f32 %v1711_v33, %v1703_v17  ;;  %v1670_v39 = vpack.c.bf16 %v600_v11, %v599_v37  ;;  %1669 = vmatprep.subr.bf16.mxu0 %v1722_v3 }
 0x37d   : > { %1621 = vmatmul.mubr.msk.f32.vlgmr.msra.gmra.mrb[12].mxu1 %vm919_vm3, %v963_v34 }
 0x37e   : > { %1671 = vmatpush3.bf16.msra.mxu0 %v1670_v39 }
 0x37f   : > { %1672 = vmatprep.subr.bf16.mxu0 %v1722_v3 }
 0x382   : > { %1674 = vmatpush3.bf16.msra.mxu0 %v1673_v44 }
 0x383   : > { %1675 = vmatprep.subr.bf16.mxu0 %v1722_v3 }
 0x386   : > { %1677 = vmatpush3.bf16.msra.mxu0 %v1676_v47 }
 0x3df   : > { %v1036_v40 = vpop.f32.mrb[2].mxu0 }
 0x3e0   : > { %v1607_v41 = vpop.f32.mrb[3].mxu0 }
 0x448   : > { %v1112_v48 = vpop.f32.mrb[10].mxu1 }
 0x449   : > { %1269 = vrot.lane.b32.xlu0 %v1112_v48, %s1729_s15  ;;  %v1612_v49 = vpop.f32.mrb[11].mxu1 }
 0x44c   : > { %v1188_v50 = vpop.f32.mrb[4].mxu0 }
 0x44d   : > { %1273 = vrot.lane.b32.xlu1 %v1188_v50, %s1730_s19  ;;  %v1617_v51 = vpop.f32.mrb[5].mxu0 }
 0x450   : > { %v1264_v52 = vpop.f32.mrb[12].mxu1 }
 0x451   : > { %1277 = vrot.lane.b32.xlu0 %v1264_v52, %s1731_s20  ;;  %v1622_v3 = vpop.f32.mrb[13].mxu1 }
 0x4bb   : > { %v1270_v53 = vpop.permute.xlu0 %1269 }
 0x4bc   : > { %v1280_v55 = vsel %vm622_vm2, %v1036_v40, %v1270_v53 }
 0x4bf   : > { %v1274_v54 = vpop.permute.xlu1 %1273 }
 0x4c0   : > { %v1282_v56 = vsel %vm1281_vm4, %v1280_v55, %v1274_v54 }
 0x4c3   : > { %v1278_v57 = vpop.permute.xlu0 %1277 }
 0x4c4   : > { %v1284_v58 = vsel %vm1283_vm5, %v1282_v56, %v1278_v57 }
 0x4c5   : > { %1640 = vmatmul.mubr.msk.f32.vlgmr.msra.gmra.mrb[6].mxu0 %vm433_vm1, %v1284_v58 }
 0x598   : > { %v1360_v60 = vpop.f32.mrb[6].mxu0 }
 0x599   : > { %v1361_v61 = vadd.f32 %v1496_v59, %v1360_v60  ;;  %v1641_v62 = vpop.f32.mrb[7].mxu0 }
 0x59b   : > { %v1364_v63 = vadd.f32 %v1361_v61, %v1880_v27  ;;  %v1498_v27 = vld [vmem:[%s2016_s9] ss:$0 sm:$0xff] }
 0x59d   : > { %v1365_v0 = vsel %vm433_vm1, %v1364_v63, 0.0 }
 0x59e   : > { %1366 = vadd.xlane.f32.xlu1 %v1365_v0 }
 0x62b   : > { %v1367_v1 = vpop.xlane.xlu1 %1366 }
 0x62c   : > { %v1369_v2 = vmul.f32 0.015625, %v1367_v1 }
 0x62e   : > { %v1370_v4 = vsub.f32 %v1364_v63, %v1369_v2 }
 0x630   : > { %v1371_v5 = vmul.f32 %v1370_v4, %v1370_v4 }
 0x632   : > { %v1372_v6 = vsel %vm433_vm1, %v1371_v5, 0.0 }
 0x633   : > { %1373 = vadd.xlane.f32.xlu0 %v1372_v6 }
 0x6c0   : > { %v1374_v7 = vpop.xlane.xlu0 %1373 }
 0x6c1   : > { %v1375_v8 = vmul.f32 0.015625, %v1374_v7 }
 0x6c3   : > { %v1376_v9 = vadd.f32 1e-05, %v1375_v8 }
 0x6c5   : > { %1712 = vrsqrt.f32 %v1376_v9 }
 0x6cf   : > { %v1713_v10 = vpop.eup %1712 }
 0x6d0   : > { %v1378_v12 = vmul.f32 %v1713_v10, %v1370_v4 }
 0x6d2   : > { %v1385_v14 = vmul.f32 %v1498_v27, %v1378_v12 }
 0x6d4   : > { %v1392_v15 = vadd.f32 %v1499_v13, %v1385_v14 }
 0x6d6   : > { %1393 = vst.msk [vmem:[%s415_s28] sm:$0xff] %vm433_vm1, %v1392_v15 }
 0x6d7 PF: > { %s21_s17 = sadd.s32 1, %s1720_s17  }
 0x6d8   : > { %p18_p4 = scmp.ge.s32.totalorder %s21_s17, 4  }
 0x6da   :  { %20 = sbr.rel (!%p18_p4) target bundleno = 1 (0x1), region = 100 }

</bundles_post_ra>
